<compile_context>
chip_gen: v7x
topology: tpu7x:2x2x1
jax: 0.10.0
libtpu: 0.0.40
codegen_flags: <defaults>
</compile_context>

<pallas_src>
import math

import jax
import jax.numpy as jnp
from jax import lax
from jax.experimental import pallas as pl
from jax.experimental.pallas import tpu as pltpu


def _cdc_fused_kernel(patches_ref, w_ref, o_ref):
    # Single fused matmul on the MXU: bf16 x bf16 -> f32 accumulate.
    o_ref[...] = jnp.dot(
        patches_ref[...], w_ref[...],
        preferred_element_type=jnp.float32,
    ).astype(o_ref.dtype)


def cdc_t_forward(x, weight, theta=0.6, tm=2048):
    """CDC_T forward.

    x:      (N, C_in, T, H, W)     float32 (NCDHW, like PyTorch)
    weight: (C_out, C_in, 3, 3, 3) float32 (OIDHW, nn.Conv3d, bias=False)
    returns (N, C_out, T, H, W)    float32
    """
    N, C_in, T, H, W = x.shape
    C_out = weight.shape[0]
    assert weight.shape[2:] == (3, 3, 3), "CDC_T kernel written for 3x3x3 conv"

    M = N * T * H * W
    K1 = C_in * 27

    # ---- fold the diff conv into the main weight (in f32, then cast) ----
    # K ordering: ci-major, then (kt, kh, kw); the center tap (1,1,1) of
    # channel ci sits at K index ci*27 + 13 and multiplies exactly x.
    w_mat = weight.reshape(C_out, K1).T  # (K1, C_out)
    if abs(float(theta)) >= 1e-8:
        kd = (weight[:, :, 0, :, :].sum(axis=(2, 3))
              + weight[:, :, 2, :, :].sum(axis=(2, 3))).T  # (C_in, C_out)
        w_mat = w_mat.at[13::27, :].add(-jnp.float32(theta) * kd)

    # ---- pad K and C_out to 128 for (8,128)-aligned, lane-dense tiles ----
    K_pad = pl.cdiv(K1, 128) * 128
    C_pad = max(128, pl.cdiv(C_out, 128) * 128)
    w_fused = jnp.zeros((K_pad, C_pad), jnp.bfloat16)
    w_fused = w_fused.at[:K1, :C_out].set(w_mat.astype(jnp.bfloat16))

    # ---- im2col in bf16 (padding=1, stride=1, dilation=1, groups=1) ----
    xb = x.astype(jnp.bfloat16)
    xp = jnp.pad(xb, ((0, 0), (0, 0), (1, 1), (1, 1), (1, 1)))
    taps = [xp[:, :, dt:dt + T, dh:dh + H, dw:dw + W]
            for dt in range(3) for dh in range(3) for dw in range(3)]
    patches = jnp.stack(taps, axis=2)                       # (N, C_in, 27, T, H, W)
    patches = jnp.transpose(patches, (0, 3, 4, 5, 1, 2))    # (N, T, H, W, C_in, 27)
    patches = patches.reshape(M, K1)
    if K_pad != K1:
        patches = jnp.pad(patches, ((0, 0), (0, K_pad - K1)))

    # ---- row tiling ----
    tm = max(8, min(tm, pl.cdiv(M, 8) * 8))
    M_pad = pl.cdiv(M, tm) * tm
    if M_pad != M:
        patches = jnp.pad(patches, ((0, M_pad - M), (0, 0)))

    out_padded = pl.pallas_call(
        _cdc_fused_kernel,
        out_shape=jax.ShapeDtypeStruct((M_pad, C_pad), jnp.float32),
        grid_spec=pltpu.PrefetchScalarGridSpec(
            num_scalar_prefetch=0,
            grid=(M_pad // tm,),
            in_specs=[
                pl.BlockSpec((tm, K_pad), lambda i: (i, 0)),
                pl.BlockSpec((K_pad, C_pad), lambda i: (0, 0)),
            ],
            out_specs=pl.BlockSpec((tm, C_pad), lambda i: (i, 0)),
        ),
        compiler_params=pltpu.CompilerParams(
            dimension_semantics=("parallel",),
            # explicit budget: ~3 MiB actually used; stays well under v7x's
            # 64 MiB physical VMEM while leaving room for larger tm / C_in.
            vmem_limit_bytes=48 * 1024 * 1024,
        ),
    )(patches, w_fused)

    out = out_padded[:M, :C_out].reshape(N, T, H, W, C_out)
    return jnp.transpose(out, (0, 4, 1, 2, 3)).astype(x.dtype)  # back to NCDHW


def _reference(x, weight, theta):
    """Pure-JAX f32 reference mirroring the PyTorch forward."""
    out_normal = lax.conv_general_dilated(
        x, weight, window_strides=(1, 1, 1),
        padding=((1, 1), (1, 1), (1, 1)),
        dimension_numbers=("NCDHW", "OIDHW", "NCDHW"),
        precision=lax.Precision.HIGHEST)
    if math.fabs(theta - 0.0) < 1e-8:
        return out_normal
    kd = (weight[:, :, 0, :, :].sum(axis=(2, 3))
          + weight[:, :, 2, :, :].sum(axis=(2, 3)))
    out_diff = jnp.einsum("ncthw,oc->nothw", x, kd,
                          precision=lax.Precision.HIGHEST)
    return out_normal - theta * out_diff


if __name__ == "__main__":
    key = jax.random.PRNGKey(0)
    kx, kw_ = jax.random.split(key)

    N, C_in, C_out, T, H, W = 2, 4, 8, 8, 16, 16
    theta = 0.6

    x = jax.random.normal(kx, (N, C_in, T, H, W), dtype=jnp.float32)
    # deterministic conv weight init (Kaiming-uniform-like scale), bias=False
    fan_in = C_in * 3 * 3 * 3
    bound = 1.0 / math.sqrt(fan_in)
    weight = jax.random.uniform(kw_, (C_out, C_in, 3, 3, 3),
                                dtype=jnp.float32, minval=-bound, maxval=bound)

    out = cdc_t_forward(x, weight, theta=theta)
    out = jax.block_until_ready(out)

    ref = _reference(x, weight, theta)
    assert out.shape == (N, C_out, T, H, W)
    # bf16 operands with f32 accumulation -> loosened tolerance vs f32 reference.
    assert jnp.allclose(out, ref, rtol=2e-2, atol=3e-2), (
        "max abs err = %f" % float(jnp.max(jnp.abs(out - ref))))

    print("KERNEL_OK")
</pallas_src>

<mosaic_0001>
module attributes {stable_mosaic.version = 11 : i64} {
  func.func @_cdc_fused_kernel(%arg0: i32, %arg1: memref<2048x128xbf16, #tpu.memory_space<vmem>>, %arg2: memref<128x128xbf16, #tpu.memory_space<vmem>>, %arg3: memref<2048x128xf32, #tpu.memory_space<vmem>>) attributes {dimension_semantics = [#tpu.dimension_semantics<parallel>], iteration_bounds = array<i64: 2>, scalar_prefetch = 0 : i64, scratch_operands = 0 : i64, tpu.core_type = #tpu.core_type<tc>, window_params = [{transform_indices = @transform_0, window_bounds = array<i64: 2048, 128>}, {pipeline_mode = #tpu.pipeline_mode<synchronous>, transform_indices = @transform_1, window_bounds = array<i64: 128, 128>}, {transform_indices = @transform_2, window_bounds = array<i64: 2048, 128>}]} {
    %c0 = arith.constant 0 : index
    %c0_0 = arith.constant 0 : index
    %0 = vector.load %arg1[%c0, %c0_0] : memref<2048x128xbf16, #tpu.memory_space<vmem>>, vector<2048x128xbf16>
    %c0_1 = arith.constant 0 : index
    %c0_2 = arith.constant 0 : index
    %1 = vector.load %arg2[%c0_1, %c0_2] : memref<128x128xbf16, #tpu.memory_space<vmem>>, vector<128x128xbf16>
    %cst = arith.constant dense<0.000000e+00> : vector<2048x128xf32>
    %2 = tpu.matmul %0, %1, %cst {dimension_numbers = #tpu.dot_dimension_numbers<[1], [0], [0], [1], [0, 0, 1, 1], [], []>} : vector<2048x128xbf16>, vector<128x128xbf16>, vector<2048x128xf32> -> vector<2048x128xf32>
    %c0_3 = arith.constant 0 : index
    %c0_4 = arith.constant 0 : index
    %3 = vector.load %arg3[%c0_3, %c0_4] : memref<2048x128xf32, #tpu.memory_space<vmem>>, vector<2048x128xf32>
    tpu.vector_store %arg3[%c0_3, %c0_4], %2 {strides = array<i32>} : memref<2048x128xf32, #tpu.memory_space<vmem>>, vector<2048x128xf32>,
    return
  }
  func.func @transform_0(%arg0: i32) -> (i32, i32) {
    %c0_i32 = arith.constant 0 : i32
    %c0_i32_0 = arith.constant 0 : i32
    return %arg0, %c0_i32 : i32, i32
  }
  func.func @transform_1(%arg0: i32) -> (i32, i32) {
    %c0_i32 = arith.constant 0 : i32
    %c0_i32_0 = arith.constant 0 : i32
    %c0_i32_1 = arith.constant 0 : i32
    return %c0_i32, %c0_i32_0 : i32, i32
  }
  func.func @transform_2(%arg0: i32) -> (i32, i32) {
    %c0_i32 = arith.constant 0 : i32
    %c0_i32_0 = arith.constant 0 : i32
    return %arg0, %c0_i32 : i32, i32
  }
}

</mosaic_0001>

<bundles_post_ra>
// kernel: tpu_custom_call.1
= control target key start
LH: loop header
LB: loop body
LE: loop exit
PB: predicated region body
PF: predicated region fallthrough
CT: control target
= control target key end

     0   :  { %7 = vsyncpa [#allocation3], 0  ;;  %s4202_s0 = inlined_call_operand.hbm [shape: bf16[4096,128], index: 0, kind: input, shape index: {}]   ;;  %s4203_s1 = inlined_call_operand.hbm [shape: bf16[128,128], index: 1, kind: input, shape index: {}]   ;;  %s4204_s2 = inlined_call_operand.hbm [shape: f32[4096,128], index: 2, kind: output, shape index: {}]  }
   0x1   :  { %9 = vsyncpa [#allocation3 + $0x1], 0 }
   0x2   :  { %10 = vsyncpa [#allocation6], 0 }
   0x3   :  { %11 = vsyncpa [#allocation4], 0 }
   0x4   :  { %13 = vsyncpa [#allocation4 + $0x1], 0  ;;  %s3605_s9 = smov 0   ;;  %s3607_s10 = smov 0  }
   0x5   :  { %s3609_s11 = smov 0   ;;  %s3611_s12 = smov 0  }
   0x6 LB: > { %s3626_s13 = sadd.s32 4294967295, %s3581_s12   ;;  %s2678_s14 = sadd.s32 4294967294, %s3581_s12   ;;  %s3581_s12 = sphi %s3611_s12, %s4224_s12   ;;  %s3577_s11 = sphi %s3609_s11, %s4223_s11   ;;  %s3573_s10 = sphi %s3607_s10, %s4222_s10   ;;  %s3569_s9 = sphi %s3605_s9, %s4221_s9  }
   0x7   : > { %p39_p0 = scmp.ne.s32.totalorder %s3573_s10, %s3569_s9  ;;  %p4205_p1 = scmp.eq.s32.totalorder %s3626_s13, 0 }
   0x8   : > { %p90_p3 = scmp.eq.s32.totalorder %s2678_s14, 1  ;;  %p2679_p5 = scmp.ge.s32.totalorder %s3581_s12, 1 }
   0x9   : > { %p3635_p4 = por %p4205_p1, %p39_p0  ;;  %p97_p7 = scmp.lt.s32.totalorder %s3581_s12, 3 }
   0xa   : > { %p3640_p6 = por %p90_p3, %p39_p0  ;;  %s3583_s18 = smov [#allocation5]  }
   0xb   : > { %s4208_s15 = scalar_select %p3635_p4, 1, 0 }
   0xc   : > { %s4209_s16 = scalar_select %p3640_p6, 1, 0 }
   0xd   : > { %p3645_p8 = pnand %p2679_p5, %p97_p7  ;;  %s109_s19 = sshll.u32 %s3583_s18, 4  ;;  %s3649_s19 = int_to_ptr.vmem [resolvable:$true] %s109_s19 }
   0xe   : > { %s3661_s21 = sadd.s32 1, %s3581_s12   ;;  %s26_s22 = sadd.s32 1, %s3577_s11 }
   0xf   : > { %s4210_s17 = scalar_select %p3645_p8, 1, 0 }
  0x10   : > { %p3264_p9 = pneg %p3645_p8  ;;  %s23_s23 = ssub.s32 %s3581_s12, %s3661_s21 }
  0x11   : > { %s3453_s26 = scalar_lea.hbm %s4203_s1, 1024 }
  0x12   : > { %p3656_p11 = pnand %p3264_p9, %p4205_p1  ;;  %p3454_p12 = scmp.ne.s32.totalorder %s4203_s1, %s3453_s26 }
  0x13   : > { %p3460_p5 = scmp.lt.u32.totalorder %s3453_s26, %s4203_s1 }
  0x14   : > { %p3455_p13 = pneg %p3656_p11 }
  0x16   : > { %p3456_p0 = pnand %p3455_p13, %p3454_p12 }
  0x18   : > { %p3457_p3 = pneg %p3456_p0 }
  0x1a   : > { %p3462_p7 = pnand %p3460_p5, %p3457_p3 }
  0x1c   : > { %3465 = shalt.err (!%p3462_p7)
}
  0x1d   : > { %s3466_s3 = scalar_lea.vmem %s3649_s19, 1024  ;;  %p3474_p2 = scmp.lt.s32.totalorder %s3649_s19, %s3649_s19 }
  0x1e   : > { %p3467_p9 = scmp.ne.s32.totalorder %s3649_s19, %s3466_s3  ;;  %p3475_p6 = scmp.lt.s32.totalorder %s3466_s3, %s3466_s3 }
  0x20   : > { %p3469_p10 = pnand %p3467_p9, %p3455_p13  ;;  %p3476_p4 = por %p3475_p6, %p3474_p2 }
  0x22   : > { %p3470_p1 = pneg %p3469_p10 }
  0x24   : > { %p3477_p8 = pnand %p3476_p4, %p3470_p1 }
  0x26   : > { %3480 = shalt.err (!%p3477_p8)
}
  0x27   : > { %s3584_s4 = smov 64   ;;  %s3585_s5 = smov 4  }
  0x28   : > { %3267 = dma.hbm_to_vmem [thread:$0]  (!%p3656_p11), %s4203_s1, 1024, %s3649_s19, [#allocation6], %s3584_s4, %s3584_s4, %s3585_s5  }
  0x29   : > { %p24_p1 = scmp.eq.s32.totalorder %s23_s23, 0  ;;  %p33_p2 = scmp.ne.s32.totalorder %s3577_s11, %s3573_s10 }
  0x2a   : > { %p34_p4 = scmp.eq.s32.totalorder %s3581_s12, 0  ;;  %p3277_p6 = scmp.lt.s32.totalorder %s3581_s12, 2 }
  0x2b   : > { %s3695_s8 = scalar_select %p24_p1, %s3577_s11, %s26_s22  }
  0x2c   : > { %p35_p8 = por %p34_p4, %p33_p2  ;;  %p4212_p10 = scmp.eq.s32.totalorder %s3626_s13, 1 }
  0x2d   : > { %s123_s18 = sand.u32 1, %s3577_s11   ;;  %s2830_s20 = sshll.u32 %s3581_s12, 14 }
  0x2e   : > { %p3699_p12 = por %p4212_p10, %p33_p2  ;;  %s2682_s24 = sshll.u32 %s123_s18, 10 }
  0x2f   : > { %s3708_s27 = scalar_lea.hbm %s4202_s0, %s2830_s20  ;;  %s127_s19 = scalar_lea.vmem [#allocation2], %s2682_s24 }
  0x30   : > { %s134_s22 = sshll.u32 %s127_s19, 4  ;;  %p3710_p11 = pnand %p3277_p6, %p35_p8  ;;  %s3714_s22 = int_to_ptr.vmem [resolvable:$true] %s134_s22 }
  0x31   : > { %s3716_s28 = scalar_lea.sflag [#allocation3], %s123_s18  ;;  %s3481_s29 = scalar_lea.hbm %s3708_s27, 16384 }
  0x32   : > { %p3482_p13 = scmp.ne.s32.totalorder %s3708_s27, %s3481_s29  ;;  %p3483_p0 = pneg %p3710_p11 }
  0x33   : > { %s3486_s6 = scalar_lea.hbm %s4202_s0, 32768  ;;  %p3487_p7 = scmp.lt.u32.totalorder %s3708_s27, %s4202_s0 }
  0x34   : > { %p3484_p3 = pnand %p3483_p0, %p3482_p13  ;;  %p3488_p9 = scmp.lt.u32.totalorder %s3486_s6, %s3481_s29 }
  0x35   : > { %p3490_p2 = scmp.lt.u32.totalorder %s3481_s29, %s3708_s27 }
  0x36   : > { %p3485_p5 = pneg %p3484_p3  ;;  %p3489_p1 = por %p3488_p9, %p3487_p7 }
  0x38   : > { %p3491_p4 = por %p3490_p2, %p3489_p1 }
  0x3a   : > { %p3492_p6 = pnand %p3491_p4, %p3485_p5 }
  0x3c   : > { %3495 = shalt.err (!%p3492_p6)
}
  0x3d   : > { %s3496_s18 = scalar_lea.vmem %s3714_s22, 16384  ;;  %s3586_s24 = smov [#allocation2]  }
  0x3e   : > { %p3497_p8 = scmp.ne.s32.totalorder %s3714_s22, %s3496_s18  ;;  %s3501_s25 = sshll.u32 %s3586_s24, 4  ;;  %s3502_s25 = int_to_ptr.vmem [resolvable:$false] %s3501_s25 }
  0x3f   : > { %s3503_s26 = scalar_lea.vmem %s3502_s25, 32768  ;;  %p3504_p3 = scmp.lt.s32.totalorder %s3714_s22, %s3502_s25 }
  0x40   : > { %p3499_p10 = pnand %p3497_p8, %p3483_p0  ;;  %p3505_p7 = scmp.lt.s32.totalorder %s3503_s26, %s3496_s18 }
  0x42   : > { %p3500_p13 = pneg %p3499_p10  ;;  %p3506_p9 = por %p3505_p7, %p3504_p3 }
  0x44   : > { %p3507_p1 = pnand %p3506_p9, %p3500_p13 }
  0x46   : > { %3510 = shalt.err (!%p3507_p1)
}
  0x47   : > { %3271 = dma.hbm_to_vmem [thread:$0]  (!%p3710_p11), %s3708_s27, 16384, %s3714_s22, %s3716_s28, %s3584_s4, %s3584_s4, %s3585_s5  }
  0x48   : > { %p4215_p0 = scmp.ne.s32.totalorder %s4210_s17, 0 }
  0x49   : > { %s3750_s19 = sand.u32 (!%p4215_p0), 1, %s3573_s10   ;;  %p4216_p5 = scmp.ne.s32.totalorder (!%p4215_p0), %s4208_s15, 0 }
  0x4a   : > { %146 = sbr.rel (%p4215_p0) target bundleno = 596 (0x254), region = 28  ;;  %s2686_s29 = sshll.u32 (!%p4215_p0), %s3750_s19, 10 }
  0x4b   : > { %s149_s30 = scalar_lea.sflag (!%p4215_p0), [#allocation3], %s3750_s19  ;;  %s3754_s3 = scalar_lea.vmem (!%p4215_p0), [#allocation2], %s2686_s29 }
  0x51   : > { %3556 = dma.done.wait (%p4216_p5), %s149_s30, 16384  }
  0x52   : > { %3558 = vsyncadd (%p4216_p5), %s149_s30, 4294950912  ;;  %p4217_p11 = scmp.eq.s32.totalorder %s3626_s13, 0 }
  0x54   : > { %3560 = dma.done.wait (%p4217_p11), [#allocation6], 1024   ;;  %p4218_p2 = pmov %p4217_p11 }
  0x55   : > { %v3317_v0 = vld [vmem:[#allocation5] sm:$0xff]   ;;  %v3318_v1 = vld [vmem:[#allocation5 + $0x8] sm:$0xff]   ;;  %v3319_v2 = vld [vmem:[#allocation5 + $0x10] sm:$0xff]   ;;  %s2688_s15 = sshll.u32 %s3750_s19, 11  ;;  %s2831_s4 = sshll.u32 %s3626_s13, 15 }
  0x56   : > { %3562 = vsyncadd (%p4218_p2), [#allocation6], 4294966272  ;;  %2968 = vmatprep.subr.bf16.mxu0 %v3317_v0  ;;  %3240 = vmatprep.subr.bf16.mxu1 %v3317_v0  ;;  %v3320_v3 = vld [vmem:[#allocation5 + $0x18] sm:$0xff]   ;;  %v3325_v4 = vld [vmem:[%s3754_s3] sm:$0xff]   ;;  %s3875_s17 = scalar_lea.vmem [#allocation7], %s2688_s15  ;;  %s4150_s23 = scalar_lea.hbm %s4204_s2, %s2831_s4 }
  0x57   : > { %2969 = vmatpush3.bf16.msra.mxu0 %v3317_v0  ;;  %3248 = vmatpush3.bf16.msra.mxu1 %v3317_v0  ;;  %v3326_v5 = vld [vmem:[%s3754_s3 + $0x200] sm:$0xff]   ;;  %v3322_v7 = vld [vmem:[#allocation5 + $0x28] sm:$0xff]   ;;  %v3323_v8 = vld [vmem:[#allocation5 + $0x30] sm:$0xff]   ;;  %s2595_s5 = sshll.u32 %s3875_s17, 4  ;;  %s2582_s13 = scalar_lea.sflag [#allocation4], %s3750_s19  ;;  %s4152_s5 = int_to_ptr.vmem [resolvable:$true] %s2595_s5 }
  0x58   : > { %2970 = vmatprep.subr.bf16.mxu0 %v3318_v1  ;;  %3241 = vmatprep.subr.bf16.mxu1 %v3318_v1  ;;  %v3321_v6 = vld [vmem:[#allocation5 + $0x20] sm:$0xff]   ;;  %v3324_v9 = vld [vmem:[#allocation5 + $0x38] sm:$0xff]   ;;  %v3327_v10 = vld [vmem:[%s3754_s3 + $0x8] sm:$0xff]   ;;  %s3511_s28 = scalar_lea.vmem %s4152_s5, 32768  ;;  %s3587_s6 = smov [#allocation7]  }
  0x59   : > { %2984 = vmatprep.mubr.bf16.mxu0 %v3325_v4  ;;  %3112 = vmatprep.mubr.bf16.mxu1 %v3326_v5  ;;  %v3328_v11 = vld [vmem:[%s3754_s3 + $0x208] sm:$0xff]   ;;  %v3329_v12 = vld [vmem:[%s3754_s3 + $0x10] sm:$0xff]   ;;  %v3331_v14 = vld [vmem:[%s3754_s3 + $0x18] sm:$0xff]   ;;  %p3512_p4 = scmp.ne.s32.totalorder %s4152_s5, %s3511_s28  ;;  %s3515_s7 = sshll.u32 %s3587_s6, 4  ;;  %s3516_s7 = int_to_ptr.vmem [resolvable:$false] %s3515_s7 }
  0x5a   : > { %v3330_v13 = vld [vmem:[%s3754_s3 + $0x210] sm:$0xff]   ;;  %v3332_v15 = vld [vmem:[%s3754_s3 + $0x218] sm:$0xff]   ;;  %v3333_v16 = vld [vmem:[%s3754_s3 + $0x20] sm:$0xff]   ;;  %s3517_s20 = scalar_lea.vmem %s3516_s7, 65536  ;;  %p3518_p10 = scmp.lt.s32.totalorder %s4152_s5, %s3516_s7 }
  0x5b   : > { %2971 = vmatpush3.bf16.msra.mxu0 %v3318_v1  ;;  %3249 = vmatpush3.bf16.msra.mxu1 %v3318_v1  ;;  %v3334_v17 = vld [vmem:[%s3754_s3 + $0x220] sm:$0xff]   ;;  %v3335_v18 = vld [vmem:[%s3754_s3 + $0x28] sm:$0xff]   ;;  %v3337_v20 = vld [vmem:[%s3754_s3 + $0x30] sm:$0xff]   ;;  %p3513_p6 = pnand %p3512_p4, %p3699_p12  ;;  %p3519_p13 = scmp.lt.s32.totalorder %s3517_s20, %s3511_s28 }
  0x5c   : > { %2972 = vmatprep.subr.bf16.mxu0 %v3319_v2  ;;  %3242 = vmatprep.subr.bf16.mxu1 %v3319_v2  ;;  %v3336_v19 = vld [vmem:[%s3754_s3 + $0x228] sm:$0xff]   ;;  %v3338_v21 = vld [vmem:[%s3754_s3 + $0x230] sm:$0xff]   ;;  %v3339_v22 = vld [vmem:[%s3754_s3 + $0x38] sm:$0xff]  }
  0x5d   : > { %v3340_v23 = vld [vmem:[%s3754_s3 + $0x238] sm:$0xff]   ;;  %v3341_v24 = vld [vmem:[%s3754_s3 + $0x40] sm:$0xff]   ;;  %v3343_v26 = vld [vmem:[%s3754_s3 + $0x48] sm:$0xff]   ;;  %p3514_p8 = pneg %p3513_p6  ;;  %p3520_p3 = por %p3519_p13, %p3518_p10 }
  0x5e   : > { %v3342_v25 = vld [vmem:[%s3754_s3 + $0x240] sm:$0xff]   ;;  %v3344_v27 = vld [vmem:[%s3754_s3 + $0x248] sm:$0xff]   ;;  %v3345_v28 = vld [vmem:[%s3754_s3 + $0x50] sm:$0xff]  }
  0x5f   : > { %2973 = vmatpush3.bf16.msra.mxu0 %v3319_v2  ;;  %3250 = vmatpush3.bf16.msra.mxu1 %v3319_v2  ;;  %v3346_v29 = vld [vmem:[%s3754_s3 + $0x250] sm:$0xff]   ;;  %v3347_v30 = vld [vmem:[%s3754_s3 + $0x58] sm:$0xff]   ;;  %v3349_v32 = vld [vmem:[%s3754_s3 + $0x60] sm:$0xff]   ;;  %p3521_p7 = pnand %p3520_p3, %p3514_p8 }
  0x60   : > { %2974 = vmatprep.subr.bf16.mxu0 %v3320_v3  ;;  %3243 = vmatprep.subr.bf16.mxu1 %v3320_v3  ;;  %v3348_v31 = vld [vmem:[%s3754_s3 + $0x258] sm:$0xff]   ;;  %v3350_v33 = vld [vmem:[%s3754_s3 + $0x260] sm:$0xff]   ;;  %v3351_v34 = vld [vmem:[%s3754_s3 + $0x68] sm:$0xff]  }
  0x61   : > { %v3352_v35 = vld [vmem:[%s3754_s3 + $0x268] sm:$0xff]   ;;  %v3353_v36 = vld [vmem:[%s3754_s3 + $0x70] sm:$0xff]   ;;  %v3355_v38 = vld [vmem:[%s3754_s3 + $0x78] sm:$0xff]  }
  0x62   : > { %v3354_v37 = vld [vmem:[%s3754_s3 + $0x270] sm:$0xff]   ;;  %v3356_v39 = vld [vmem:[%s3754_s3 + $0x278] sm:$0xff]   ;;  %v3357_v40 = vld [vmem:[%s3754_s3 + $0x80] sm:$0xff]  }
  0x63   : > { %2975 = vmatpush3.bf16.msra.mxu0 %v3320_v3  ;;  %3251 = vmatpush3.bf16.msra.mxu1 %v3320_v3  ;;  %v3358_v41 = vld [vmem:[%s3754_s3 + $0x280] sm:$0xff]   ;;  %v3359_v42 = vld [vmem:[%s3754_s3 + $0x88] sm:$0xff]   ;;  %v3361_v44 = vld [vmem:[%s3754_s3 + $0x90] sm:$0xff]  }
  0x64   : > { %2976 = vmatprep.subr.bf16.mxu0 %v3321_v6  ;;  %3244 = vmatprep.subr.bf16.mxu1 %v3321_v6  ;;  %v3360_v43 = vld [vmem:[%s3754_s3 + $0x288] sm:$0xff]   ;;  %v3362_v45 = vld [vmem:[%s3754_s3 + $0x290] sm:$0xff]   ;;  %v3363_v46 = vld [vmem:[%s3754_s3 + $0x98] sm:$0xff]  }
  0x65   : > { %v3364_v47 = vld [vmem:[%s3754_s3 + $0x298] sm:$0xff]   ;;  %v3365_v48 = vld [vmem:[%s3754_s3 + $0xa0] sm:$0xff]   ;;  %v3367_v50 = vld [vmem:[%s3754_s3 + $0xa8] sm:$0xff]  }
  0x66   : > { %v3366_v49 = vld [vmem:[%s3754_s3 + $0x2a0] sm:$0xff]   ;;  %v3368_v51 = vld [vmem:[%s3754_s3 + $0x2a8] sm:$0xff]   ;;  %v3369_v52 = vld [vmem:[%s3754_s3 + $0xb0] sm:$0xff]  }
  0x67   : > { %2977 = vmatpush3.bf16.msra.mxu0 %v3321_v6  ;;  %3252 = vmatpush3.bf16.msra.mxu1 %v3321_v6  ;;  %v3370_v53 = vld [vmem:[%s3754_s3 + $0x2b0] sm:$0xff]   ;;  %v3371_v54 = vld [vmem:[%s3754_s3 + $0xb8] sm:$0xff]   ;;  %v3373_v56 = vld [vmem:[%s3754_s3 + $0xc0] sm:$0xff]  }
  0x68   : > { %2978 = vmatprep.subr.bf16.mxu0 %v3322_v7  ;;  %3245 = vmatprep.subr.bf16.mxu1 %v3322_v7  ;;  %v3372_v55 = vld [vmem:[%s3754_s3 + $0x2b8] sm:$0xff]   ;;  %v3374_v57 = vld [vmem:[%s3754_s3 + $0x2c0] sm:$0xff]   ;;  %v3375_v58 = vld [vmem:[%s3754_s3 + $0xc8] sm:$0xff]  }
  0x69   : > { %v3376_v59 = vld [vmem:[%s3754_s3 + $0x2c8] sm:$0xff]   ;;  %v3377_v60 = vld [vmem:[%s3754_s3 + $0xd0] sm:$0xff]   ;;  %v3379_v62 = vld [vmem:[%s3754_s3 + $0xd8] sm:$0xff]  }
  0x6a   : > { %v3378_v61 = vld [vmem:[%s3754_s3 + $0x2d0] sm:$0xff]   ;;  %v3380_v63 = vld [vmem:[%s3754_s3 + $0x2d8] sm:$0xff]   ;;  %v3381_v0 = vld [vmem:[%s3754_s3 + $0xe0] sm:$0xff]  }
  0x6b   : > { %2979 = vmatpush3.bf16.msra.mxu0 %v3322_v7  ;;  %3253 = vmatpush3.bf16.msra.mxu1 %v3322_v7  ;;  %v3382_v1 = vld [vmem:[%s3754_s3 + $0x2e0] sm:$0xff]   ;;  %v3383_v2 = vld [vmem:[%s3754_s3 + $0xe8] sm:$0xff]   ;;  %v3385_v4 = vld [vmem:[%s3754_s3 + $0xf0] sm:$0xff]  }
  0x6c   : > { %2980 = vmatprep.subr.bf16.mxu0 %v3323_v8  ;;  %3246 = vmatprep.subr.bf16.mxu1 %v3323_v8  ;;  %v3384_v3 = vld [vmem:[%s3754_s3 + $0x2e8] sm:$0xff]   ;;  %v3386_v5 = vld [vmem:[%s3754_s3 + $0x2f0] sm:$0xff]   ;;  %v3387_v6 = vld [vmem:[%s3754_s3 + $0xf8] sm:$0xff]  }
  0x6d   : > { %v3388_v7 = vld [vmem:[%s3754_s3 + $0x2f8] sm:$0xff]  }
  0x6f   : > { %2981 = vmatpush3.bf16.msra.mxu0 %v3323_v8  ;;  %3254 = vmatpush3.bf16.msra.mxu1 %v3323_v8  ;;  %v3389_v8 = vld [vmem:[%s3754_s3 + $0x100] sm:$0xff]  }
  0x70   : > { %2982 = vmatprep.subr.bf16.mxu0 %v3324_v9  ;;  %3247 = vmatprep.subr.bf16.mxu1 %v3324_v9 }
  0x73   : > { %2983 = vmatpush3.bf16.msra.mxu0 %v3324_v9  ;;  %3255 = vmatpush3.bf16.msra.mxu1 %v3324_v9  ;;  %v3390_v9 = vld [vmem:[%s3754_s3 + $0x300] sm:$0xff]  }
  0x76   : > { %2985 = vmatmul.mubr.bf16.vlgmr.msra.gmra.mrb[0].mxu0 %v3327_v10  ;;  %3113 = vmatmul.mubr.bf16.vlgmr.msra.gmra.mrb[0].mxu1 %v3328_v11  ;;  %v3391_v10 = vld [vmem:[%s3754_s3 + $0x108] sm:$0xff]  }
  0x77   : > { %2988 = vmatprep.mubr.bf16.mxu0 %v3329_v12  ;;  %3116 = vmatprep.mubr.bf16.mxu1 %v3330_v13  ;;  %v3392_v11 = vld [vmem:[%s3754_s3 + $0x308] sm:$0xff]   ;;  %v3393_v12 = vld [vmem:[%s3754_s3 + $0x110] sm:$0xff]  }
  0x78   : > { %v3394_v13 = vld [vmem:[%s3754_s3 + $0x310] sm:$0xff]  }
  0x7e   : > { %2989 = vmatmul.mubr.bf16.gmra.mrb[4].mxu0 %v3331_v14  ;;  %3117 = vmatmul.mubr.bf16.gmra.mrb[4].mxu1 %v3332_v15  ;;  %v3395_v14 = vld [vmem:[%s3754_s3 + $0x118] sm:$0xff]  }
  0x7f   : > { %2992 = vmatprep.mubr.bf16.mxu0 %v3333_v16  ;;  %3120 = vmatprep.mubr.bf16.mxu1 %v3334_v17  ;;  %v3396_v15 = vld [vmem:[%s3754_s3 + $0x318] sm:$0xff]   ;;  %v3397_v16 = vld [vmem:[%s3754_s3 + $0x120] sm:$0xff]  }
  0x80   : > { %v3398_v17 = vld [vmem:[%s3754_s3 + $0x320] sm:$0xff]  }
  0x86   : > { %2993 = vmatmul.mubr.bf16.gmra.mrb[8].mxu0 %v3335_v18  ;;  %3121 = vmatmul.mubr.bf16.gmra.mrb[8].mxu1 %v3336_v19  ;;  %v3399_v18 = vld [vmem:[%s3754_s3 + $0x128] sm:$0xff]  }
  0x87   : > { %2996 = vmatprep.mubr.bf16.mxu0 %v3337_v20  ;;  %3124 = vmatprep.mubr.bf16.mxu1 %v3338_v21  ;;  %v3400_v19 = vld [vmem:[%s3754_s3 + $0x328] sm:$0xff]   ;;  %v3401_v20 = vld [vmem:[%s3754_s3 + $0x130] sm:$0xff]  }
  0x88   : > { %v3402_v21 = vld [vmem:[%s3754_s3 + $0x330] sm:$0xff]  }
  0x8e   : > { %2997 = vmatmul.mubr.bf16.gmra.mrb[12].mxu0 %v3339_v22  ;;  %3125 = vmatmul.mubr.bf16.gmra.mrb[12].mxu1 %v3340_v23  ;;  %v3403_v22 = vld [vmem:[%s3754_s3 + $0x138] sm:$0xff]  }
  0x8f   : > { %3000 = vmatprep.mubr.bf16.mxu0 %v3341_v24  ;;  %3128 = vmatprep.mubr.bf16.mxu1 %v3342_v25  ;;  %v3404_v23 = vld [vmem:[%s3754_s3 + $0x338] sm:$0xff]   ;;  %v3405_v24 = vld [vmem:[%s3754_s3 + $0x140] sm:$0xff]  }
  0x90   : > { %v3406_v25 = vld [vmem:[%s3754_s3 + $0x340] sm:$0xff]  }
  0x96   : > { %3001 = vmatmul.mubr.bf16.gmra.mrb[16].mxu0 %v3343_v26  ;;  %3129 = vmatmul.mubr.bf16.gmra.mrb[16].mxu1 %v3344_v27  ;;  %v3407_v26 = vld [vmem:[%s3754_s3 + $0x148] sm:$0xff]  }
  0x97   : > { %3004 = vmatprep.mubr.bf16.mxu0 %v3345_v28  ;;  %3132 = vmatprep.mubr.bf16.mxu1 %v3346_v29  ;;  %v3408_v27 = vld [vmem:[%s3754_s3 + $0x348] sm:$0xff]   ;;  %v3409_v28 = vld [vmem:[%s3754_s3 + $0x150] sm:$0xff]  }
  0x98   : > { %v3410_v29 = vld [vmem:[%s3754_s3 + $0x350] sm:$0xff]  }
  0x9e   : > { %3005 = vmatmul.mubr.bf16.gmra.mrb[20].mxu0 %v3347_v30  ;;  %3133 = vmatmul.mubr.bf16.gmra.mrb[20].mxu1 %v3348_v31  ;;  %v3411_v30 = vld [vmem:[%s3754_s3 + $0x158] sm:$0xff]  }
  0x9f   : > { %3008 = vmatprep.mubr.bf16.mxu0 %v3349_v32  ;;  %3136 = vmatprep.mubr.bf16.mxu1 %v3350_v33  ;;  %v3412_v31 = vld [vmem:[%s3754_s3 + $0x358] sm:$0xff]   ;;  %v3413_v32 = vld [vmem:[%s3754_s3 + $0x160] sm:$0xff]  }
  0xa0   : > { %v3414_v33 = vld [vmem:[%s3754_s3 + $0x360] sm:$0xff]  }
  0xa6   : > { %3009 = vmatmul.mubr.bf16.gmra.mrb[24].mxu0 %v3351_v34  ;;  %3137 = vmatmul.mubr.bf16.gmra.mrb[24].mxu1 %v3352_v35  ;;  %v3415_v34 = vld [vmem:[%s3754_s3 + $0x168] sm:$0xff]  }
  0xa7   : > { %3012 = vmatprep.mubr.bf16.mxu0 %v3353_v36  ;;  %3140 = vmatprep.mubr.bf16.mxu1 %v3354_v37  ;;  %v3416_v35 = vld [vmem:[%s3754_s3 + $0x368] sm:$0xff]   ;;  %v3417_v36 = vld [vmem:[%s3754_s3 + $0x170] sm:$0xff]  }
  0xa8   : > { %v3418_v37 = vld [vmem:[%s3754_s3 + $0x370] sm:$0xff]  }
  0xae   : > { %3013 = vmatmul.mubr.bf16.gmra.mrb[28].mxu0 %v3355_v38  ;;  %3141 = vmatmul.mubr.bf16.gmra.mrb[28].mxu1 %v3356_v39  ;;  %v3419_v38 = vld [vmem:[%s3754_s3 + $0x178] sm:$0xff]  }
  0xaf   : > { %3016 = vmatprep.mubr.bf16.mxu0 %v3357_v40  ;;  %3144 = vmatprep.mubr.bf16.mxu1 %v3358_v41  ;;  %v3420_v39 = vld [vmem:[%s3754_s3 + $0x378] sm:$0xff]   ;;  %v3421_v40 = vld [vmem:[%s3754_s3 + $0x180] sm:$0xff]  }
  0xb0   : > { %v3422_v41 = vld [vmem:[%s3754_s3 + $0x380] sm:$0xff]  }
  0xb6   : > { %3017 = vmatmul.mubr.bf16.gmra.mrb[32].mxu0 %v3359_v42  ;;  %3145 = vmatmul.mubr.bf16.gmra.mrb[32].mxu1 %v3360_v43  ;;  %v3423_v42 = vld [vmem:[%s3754_s3 + $0x188] sm:$0xff]  }
  0xb7   : > { %3020 = vmatprep.mubr.bf16.mxu0 %v3361_v44  ;;  %3148 = vmatprep.mubr.bf16.mxu1 %v3362_v45  ;;  %v3424_v43 = vld [vmem:[%s3754_s3 + $0x388] sm:$0xff]   ;;  %v3425_v44 = vld [vmem:[%s3754_s3 + $0x190] sm:$0xff]  }
  0xb8   : > { %v3426_v45 = vld [vmem:[%s3754_s3 + $0x390] sm:$0xff]  }
  0xbe   : > { %3021 = vmatmul.mubr.bf16.gmra.mrb[36].mxu0 %v3363_v46  ;;  %3149 = vmatmul.mubr.bf16.gmra.mrb[36].mxu1 %v3364_v47  ;;  %v3427_v46 = vld [vmem:[%s3754_s3 + $0x198] sm:$0xff]  }
  0xbf   : > { %3024 = vmatprep.mubr.bf16.mxu0 %v3365_v48  ;;  %3152 = vmatprep.mubr.bf16.mxu1 %v3366_v49  ;;  %v3428_v47 = vld [vmem:[%s3754_s3 + $0x398] sm:$0xff]   ;;  %v3429_v48 = vld [vmem:[%s3754_s3 + $0x1a0] sm:$0xff]  }
  0xc0   : > { %v3430_v49 = vld [vmem:[%s3754_s3 + $0x3a0] sm:$0xff]  }
  0xc6   : > { %3025 = vmatmul.mubr.bf16.gmra.mrb[40].mxu0 %v3367_v50  ;;  %3153 = vmatmul.mubr.bf16.gmra.mrb[40].mxu1 %v3368_v51  ;;  %v3431_v50 = vld [vmem:[%s3754_s3 + $0x1a8] sm:$0xff]  }
  0xc7   : > { %3028 = vmatprep.mubr.bf16.mxu0 %v3369_v52  ;;  %3156 = vmatprep.mubr.bf16.mxu1 %v3370_v53  ;;  %v3432_v51 = vld [vmem:[%s3754_s3 + $0x3a8] sm:$0xff]   ;;  %v3433_v52 = vld [vmem:[%s3754_s3 + $0x1b0] sm:$0xff]  }
  0xc8   : > { %v3434_v53 = vld [vmem:[%s3754_s3 + $0x3b0] sm:$0xff]  }
  0xce   : > { %3029 = vmatmul.mubr.bf16.gmra.mrb[44].mxu0 %v3371_v54  ;;  %3157 = vmatmul.mubr.bf16.gmra.mrb[44].mxu1 %v3372_v55 }
  0xcf   : > { %3032 = vmatprep.mubr.bf16.mxu0 %v3373_v56  ;;  %3160 = vmatprep.mubr.bf16.mxu1 %v3374_v57 }
  0xd6   : > { %3033 = vmatmul.mubr.bf16.gmra.mrb[48].mxu0 %v3375_v58  ;;  %3161 = vmatmul.mubr.bf16.gmra.mrb[48].mxu1 %v3376_v59  ;;  %v3435_v58 = vld [vmem:[%s3754_s3 + $0x1b8] sm:$0xff]  }
  0xd7   : > { %3036 = vmatprep.mubr.bf16.mxu0 %v3377_v60  ;;  %3164 = vmatprep.mubr.bf16.mxu1 %v3378_v61  ;;  %v3436_v59 = vld [vmem:[%s3754_s3 + $0x3b8] sm:$0xff]  }
  0xde   : > { %3037 = vmatmul.mubr.bf16.gmra.mrb[52].mxu0 %v3379_v62  ;;  %3165 = vmatmul.mubr.bf16.gmra.mrb[52].mxu1 %v3380_v63  ;;  %v3437_v62 = vld [vmem:[%s3754_s3 + $0x1c0] sm:$0xff]  }
  0xdf   : > { %3040 = vmatprep.mubr.bf16.mxu0 %v3381_v0  ;;  %3168 = vmatprep.mubr.bf16.mxu1 %v3382_v1  ;;  %v3438_v63 = vld [vmem:[%s3754_s3 + $0x3c0] sm:$0xff]  }
  0xe6   : > { %3041 = vmatmul.mubr.bf16.gmra.mrb[56].mxu0 %v3383_v2  ;;  %3169 = vmatmul.mubr.bf16.gmra.mrb[56].mxu1 %v3384_v3 }
  0xe7   : > { %3044 = vmatprep.mubr.bf16.mxu0 %v3385_v4  ;;  %3172 = vmatprep.mubr.bf16.mxu1 %v3386_v5 }
  0xee   : > { %3045 = vmatmul.mubr.bf16.gmra.mrb[60].mxu0 %v3387_v6  ;;  %3173 = vmatmul.mubr.bf16.gmra.mrb[60].mxu1 %v3388_v7  ;;  %v3439_v6 = vld [vmem:[%s3754_s3 + $0x1c8] sm:$0xff]  }
  0xef   : > { %3048 = vmatprep.mubr.bf16.mxu0 %v3389_v8  ;;  %3176 = vmatprep.mubr.bf16.mxu1 %v3390_v9  ;;  %v3440_v7 = vld [vmem:[%s3754_s3 + $0x3c8] sm:$0xff]  }
  0xf6   : > { %3049 = vmatmul.mubr.bf16.gmra.mrb[64].mxu0 %v3391_v10  ;;  %3177 = vmatmul.mubr.bf16.gmra.mrb[64].mxu1 %v3392_v11  ;;  %v3441_v10 = vld [vmem:[%s3754_s3 + $0x1d0] sm:$0xff]  }
  0xf7   : > { %3052 = vmatprep.mubr.bf16.mxu0 %v3393_v12  ;;  %3180 = vmatprep.mubr.bf16.mxu1 %v3394_v13  ;;  %v3442_v11 = vld [vmem:[%s3754_s3 + $0x3d0] sm:$0xff]  }
  0xfe   : > { %3053 = vmatmul.mubr.bf16.gmra.mrb[68].mxu0 %v3395_v14  ;;  %3181 = vmatmul.mubr.bf16.gmra.mrb[68].mxu1 %v3396_v15 }
  0xff   : > { %3056 = vmatprep.mubr.bf16.mxu0 %v3397_v16  ;;  %3184 = vmatprep.mubr.bf16.mxu1 %v3398_v17 }
 0x106   : > { %3057 = vmatmul.mubr.bf16.gmra.mrb[72].mxu0 %v3399_v18  ;;  %3185 = vmatmul.mubr.bf16.gmra.mrb[72].mxu1 %v3400_v19  ;;  %v3443_v18 = vld [vmem:[%s3754_s3 + $0x1d8] sm:$0xff]  }
 0x107   : > { %3060 = vmatprep.mubr.bf16.mxu0 %v3401_v20  ;;  %3188 = vmatprep.mubr.bf16.mxu1 %v3402_v21  ;;  %v3444_v19 = vld [vmem:[%s3754_s3 + $0x3d8] sm:$0xff]  }
 0x10e   : > { %3061 = vmatmul.mubr.bf16.gmra.mrb[76].mxu0 %v3403_v22  ;;  %3189 = vmatmul.mubr.bf16.gmra.mrb[76].mxu1 %v3404_v23  ;;  %v3445_v22 = vld [vmem:[%s3754_s3 + $0x1e0] sm:$0xff]  }
 0x10f   : > { %3064 = vmatprep.mubr.bf16.mxu0 %v3405_v24  ;;  %3192 = vmatprep.mubr.bf16.mxu1 %v3406_v25  ;;  %v3446_v23 = vld [vmem:[%s3754_s3 + $0x3e0] sm:$0xff]  }
 0x116   : > { %3065 = vmatmul.mubr.bf16.gmra.mrb[80].mxu0 %v3407_v26  ;;  %3193 = vmatmul.mubr.bf16.gmra.mrb[80].mxu1 %v3408_v27 }
 0x117   : > { %3068 = vmatprep.mubr.bf16.mxu0 %v3409_v28  ;;  %3196 = vmatprep.mubr.bf16.mxu1 %v3410_v29 }
 0x11e   : > { %3069 = vmatmul.mubr.bf16.gmra.mrb[84].mxu0 %v3411_v30  ;;  %3197 = vmatmul.mubr.bf16.gmra.mrb[84].mxu1 %v3412_v31  ;;  %v3447_v30 = vld [vmem:[%s3754_s3 + $0x1e8] sm:$0xff]  }
 0x11f   : > { %3072 = vmatprep.mubr.bf16.mxu0 %v3413_v32  ;;  %3200 = vmatprep.mubr.bf16.mxu1 %v3414_v33  ;;  %v3448_v31 = vld [vmem:[%s3754_s3 + $0x3e8] sm:$0xff]  }
 0x126   : > { %3073 = vmatmul.mubr.bf16.gmra.mrb[88].mxu0 %v3415_v34  ;;  %3201 = vmatmul.mubr.bf16.gmra.mrb[88].mxu1 %v3416_v35  ;;  %v3449_v34 = vld [vmem:[%s3754_s3 + $0x1f0] sm:$0xff]  }
 0x127   : > { %3076 = vmatprep.mubr.bf16.mxu0 %v3417_v36  ;;  %3204 = vmatprep.mubr.bf16.mxu1 %v3418_v37  ;;  %v3450_v35 = vld [vmem:[%s3754_s3 + $0x3f0] sm:$0xff]  }
 0x12e   : > { %3077 = vmatmul.mubr.bf16.gmra.mrb[92].mxu0 %v3419_v38  ;;  %3205 = vmatmul.mubr.bf16.gmra.mrb[92].mxu1 %v3420_v39 }
 0x12f   : > { %3080 = vmatprep.mubr.bf16.mxu0 %v3421_v40  ;;  %3208 = vmatprep.mubr.bf16.mxu1 %v3422_v41 }
 0x136   : > { %3081 = vmatmul.mubr.bf16.gmra.mrb[96].mxu0 %v3423_v42  ;;  %3209 = vmatmul.mubr.bf16.gmra.mrb[96].mxu1 %v3424_v43  ;;  %v3451_v42 = vld [vmem:[%s3754_s3 + $0x1f8] sm:$0xff]  }
 0x137   : > { %3084 = vmatprep.mubr.bf16.mxu0 %v3425_v44  ;;  %3212 = vmatprep.mubr.bf16.mxu1 %v3426_v45  ;;  %v3452_v43 = vld [vmem:[%s3754_s3 + $0x3f8] sm:$0xff]  }
 0x13e   : > { %3085 = vmatmul.mubr.bf16.gmra.mrb[100].mxu0 %v3427_v46  ;;  %3213 = vmatmul.mubr.bf16.gmra.mrb[100].mxu1 %v3428_v47 }
 0x13f   : > { %3088 = vmatprep.mubr.bf16.mxu0 %v3429_v48  ;;  %3216 = vmatprep.mubr.bf16.mxu1 %v3430_v49 }
 0x146   : > { %3089 = vmatmul.mubr.bf16.gmra.mrb[104].mxu0 %v3431_v50  ;;  %3217 = vmatmul.mubr.bf16.gmra.mrb[104].mxu1 %v3432_v51 }
 0x147   : > { %3092 = vmatprep.mubr.bf16.mxu0 %v3433_v52  ;;  %3220 = vmatprep.mubr.bf16.mxu1 %v3434_v53 }
 0x149   : > { %v2986_v54 = vpop.f32.mrb[0].mxu0  ;;  %v3114_v55 = vpop.f32.mrb[0].mxu1 }
 0x14a   : > { %2327 = vst [vmem:[%s3875_s17 + $0x10] sm:$0xff] %v2986_v54  ;;  %2455 = vst [vmem:[%s3875_s17 + $0x410] sm:$0xff] %v3114_v55  ;;  %v1302_v56 = vpop.f32.mrb[1].mxu0  ;;  %v1814_v57 = vpop.f32.mrb[1].mxu1 }
 0x14b   : > { %2325 = vst [vmem:[%s3875_s17] sm:$0xff] %v1302_v56  ;;  %2453 = vst [vmem:[%s3875_s17 + $0x400] sm:$0xff] %v1814_v57  ;;  %v2987_v60 = vpop.f32.mrb[2].mxu0  ;;  %v3115_v61 = vpop.f32.mrb[2].mxu1 }
 0x14c   : > { %2328 = vst [vmem:[%s3875_s17 + $0x18] sm:$0xff] %v2987_v60  ;;  %2456 = vst [vmem:[%s3875_s17 + $0x418] sm:$0xff] %v3115_v61  ;;  %v1305_v0 = vpop.f32.mrb[3].mxu0  ;;  %v1817_v1 = vpop.f32.mrb[3].mxu1 }
 0x14d   : > { %2326 = vst [vmem:[%s3875_s17 + $0x8] sm:$0xff] %v1305_v0  ;;  %2454 = vst [vmem:[%s3875_s17 + $0x408] sm:$0xff] %v1817_v1 }
 0x14e   : > { %3093 = vmatmul.mubr.bf16.gmra.mrb[108].mxu0 %v3435_v58  ;;  %3221 = vmatmul.mubr.bf16.gmra.mrb[108].mxu1 %v3436_v59 }
 0x14f   : > { %3096 = vmatprep.mubr.bf16.mxu0 %v3437_v62  ;;  %3224 = vmatprep.mubr.bf16.mxu1 %v3438_v63 }
 0x151   : > { %v2990_v2 = vpop.f32.mrb[4].mxu0  ;;  %v3118_v3 = vpop.f32.mrb[4].mxu1 }
 0x152   : > { %2331 = vst [vmem:[%s3875_s17 + $0x30] sm:$0xff] %v2990_v2  ;;  %2459 = vst [vmem:[%s3875_s17 + $0x430] sm:$0xff] %v3118_v3  ;;  %v1318_v4 = vpop.f32.mrb[5].mxu0  ;;  %v1830_v5 = vpop.f32.mrb[5].mxu1 }
 0x153   : > { %2329 = vst [vmem:[%s3875_s17 + $0x20] sm:$0xff] %v1318_v4  ;;  %2457 = vst [vmem:[%s3875_s17 + $0x420] sm:$0xff] %v1830_v5  ;;  %v2991_v8 = vpop.f32.mrb[6].mxu0  ;;  %v3119_v9 = vpop.f32.mrb[6].mxu1 }
 0x154   : > { %2332 = vst [vmem:[%s3875_s17 + $0x38] sm:$0xff] %v2991_v8  ;;  %2460 = vst [vmem:[%s3875_s17 + $0x438] sm:$0xff] %v3119_v9  ;;  %v1321_v12 = vpop.f32.mrb[7].mxu0  ;;  %v1833_v13 = vpop.f32.mrb[7].mxu1 }
 0x155   : > { %2330 = vst [vmem:[%s3875_s17 + $0x28] sm:$0xff] %v1321_v12  ;;  %2458 = vst [vmem:[%s3875_s17 + $0x428] sm:$0xff] %v1833_v13 }
 0x156   : > { %3097 = vmatmul.mubr.bf16.gmra.mrb[112].mxu0 %v3439_v6  ;;  %3225 = vmatmul.mubr.bf16.gmra.mrb[112].mxu1 %v3440_v7 }
 0x157   : > { %3100 = vmatprep.mubr.bf16.mxu0 %v3441_v10  ;;  %3228 = vmatprep.mubr.bf16.mxu1 %v3442_v11 }
 0x159   : > { %v2994_v14 = vpop.f32.mrb[8].mxu0  ;;  %v3122_v15 = vpop.f32.mrb[8].mxu1 }
 0x15a   : > { %2335 = vst [vmem:[%s3875_s17 + $0x50] sm:$0xff] %v2994_v14  ;;  %2463 = vst [vmem:[%s3875_s17 + $0x450] sm:$0xff] %v3122_v15  ;;  %v1334_v16 = vpop.f32.mrb[9].mxu0  ;;  %v1846_v17 = vpop.f32.mrb[9].mxu1 }
 0x15b   : > { %2333 = vst [vmem:[%s3875_s17 + $0x40] sm:$0xff] %v1334_v16  ;;  %2461 = vst [vmem:[%s3875_s17 + $0x440] sm:$0xff] %v1846_v17  ;;  %v2995_v20 = vpop.f32.mrb[10].mxu0  ;;  %v3123_v21 = vpop.f32.mrb[10].mxu1 }
 0x15c   : > { %2336 = vst [vmem:[%s3875_s17 + $0x58] sm:$0xff] %v2995_v20  ;;  %2464 = vst [vmem:[%s3875_s17 + $0x458] sm:$0xff] %v3123_v21  ;;  %v1337_v24 = vpop.f32.mrb[11].mxu0  ;;  %v1849_v25 = vpop.f32.mrb[11].mxu1 }
 0x15d   : > { %2334 = vst [vmem:[%s3875_s17 + $0x48] sm:$0xff] %v1337_v24  ;;  %2462 = vst [vmem:[%s3875_s17 + $0x448] sm:$0xff] %v1849_v25 }
 0x15e   : > { %3101 = vmatmul.mubr.bf16.gmra.mrb[116].mxu0 %v3443_v18  ;;  %3229 = vmatmul.mubr.bf16.gmra.mrb[116].mxu1 %v3444_v19 }
 0x15f   : > { %3104 = vmatprep.mubr.bf16.mxu0 %v3445_v22  ;;  %3232 = vmatprep.mubr.bf16.mxu1 %v3446_v23 }
 0x161   : > { %v2998_v26 = vpop.f32.mrb[12].mxu0  ;;  %v3126_v27 = vpop.f32.mrb[12].mxu1 }
 0x162   : > { %2339 = vst [vmem:[%s3875_s17 + $0x70] sm:$0xff] %v2998_v26  ;;  %2467 = vst [vmem:[%s3875_s17 + $0x470] sm:$0xff] %v3126_v27  ;;  %v1350_v28 = vpop.f32.mrb[13].mxu0  ;;  %v1862_v29 = vpop.f32.mrb[13].mxu1 }
 0x163   : > { %2337 = vst [vmem:[%s3875_s17 + $0x60] sm:$0xff] %v1350_v28  ;;  %2465 = vst [vmem:[%s3875_s17 + $0x460] sm:$0xff] %v1862_v29  ;;  %v2999_v32 = vpop.f32.mrb[14].mxu0  ;;  %v3127_v33 = vpop.f32.mrb[14].mxu1 }
 0x164   : > { %2340 = vst [vmem:[%s3875_s17 + $0x78] sm:$0xff] %v2999_v32  ;;  %2468 = vst [vmem:[%s3875_s17 + $0x478] sm:$0xff] %v3127_v33  ;;  %v1353_v36 = vpop.f32.mrb[15].mxu0  ;;  %v1865_v37 = vpop.f32.mrb[15].mxu1 }
 0x165   : > { %2338 = vst [vmem:[%s3875_s17 + $0x68] sm:$0xff] %v1353_v36  ;;  %2466 = vst [vmem:[%s3875_s17 + $0x468] sm:$0xff] %v1865_v37 }
 0x166   : > { %3105 = vmatmul.mubr.bf16.gmra.mrb[120].mxu0 %v3447_v30  ;;  %3233 = vmatmul.mubr.bf16.gmra.mrb[120].mxu1 %v3448_v31 }
 0x167   : > { %3108 = vmatprep.mubr.bf16.mxu0 %v3449_v34  ;;  %3236 = vmatprep.mubr.bf16.mxu1 %v3450_v35 }
 0x169   : > { %v3002_v38 = vpop.f32.mrb[16].mxu0  ;;  %v3130_v39 = vpop.f32.mrb[16].mxu1 }
 0x16a   : > { %2343 = vst [vmem:[%s3875_s17 + $0x90] sm:$0xff] %v3002_v38  ;;  %2471 = vst [vmem:[%s3875_s17 + $0x490] sm:$0xff] %v3130_v39  ;;  %v1366_v40 = vpop.f32.mrb[17].mxu0  ;;  %v1878_v41 = vpop.f32.mrb[17].mxu1 }
 0x16b   : > { %2341 = vst [vmem:[%s3875_s17 + $0x80] sm:$0xff] %v1366_v40  ;;  %2469 = vst [vmem:[%s3875_s17 + $0x480] sm:$0xff] %v1878_v41  ;;  %v3003_v44 = vpop.f32.mrb[18].mxu0  ;;  %v3131_v45 = vpop.f32.mrb[18].mxu1 }
 0x16c   : > { %2344 = vst [vmem:[%s3875_s17 + $0x98] sm:$0xff] %v3003_v44  ;;  %2472 = vst [vmem:[%s3875_s17 + $0x498] sm:$0xff] %v3131_v45  ;;  %v1369_v46 = vpop.f32.mrb[19].mxu0  ;;  %v1881_v47 = vpop.f32.mrb[19].mxu1 }
 0x16d   : > { %2342 = vst [vmem:[%s3875_s17 + $0x88] sm:$0xff] %v1369_v46  ;;  %2470 = vst [vmem:[%s3875_s17 + $0x488] sm:$0xff] %v1881_v47 }
 0x16e   : > { %3109 = vmatmul.mubr.bf16.gmra.mrb[124].mxu0 %v3451_v42  ;;  %3237 = vmatmul.mubr.bf16.gmra.mrb[124].mxu1 %v3452_v43 }
 0x171   : > { %v3006_v48 = vpop.f32.mrb[20].mxu0  ;;  %v3134_v49 = vpop.f32.mrb[20].mxu1 }
 0x172   : > { %2347 = vst [vmem:[%s3875_s17 + $0xb0] sm:$0xff] %v3006_v48  ;;  %2475 = vst [vmem:[%s3875_s17 + $0x4b0] sm:$0xff] %v3134_v49  ;;  %v1382_v50 = vpop.f32.mrb[21].mxu0  ;;  %v1894_v51 = vpop.f32.mrb[21].mxu1 }
 0x173   : > { %2345 = vst [vmem:[%s3875_s17 + $0xa0] sm:$0xff] %v1382_v50  ;;  %2473 = vst [vmem:[%s3875_s17 + $0x4a0] sm:$0xff] %v1894_v51  ;;  %v3007_v52 = vpop.f32.mrb[22].mxu0  ;;  %v3135_v53 = vpop.f32.mrb[22].mxu1 }
 0x174   : > { %2348 = vst [vmem:[%s3875_s17 + $0xb8] sm:$0xff] %v3007_v52  ;;  %2476 = vst [vmem:[%s3875_s17 + $0x4b8] sm:$0xff] %v3135_v53  ;;  %v1385_v54 = vpop.f32.mrb[23].mxu0  ;;  %v1897_v55 = vpop.f32.mrb[23].mxu1 }
 0x175   : > { %2346 = vst [vmem:[%s3875_s17 + $0xa8] sm:$0xff] %v1385_v54  ;;  %2474 = vst [vmem:[%s3875_s17 + $0x4a8] sm:$0xff] %v1897_v55 }
 0x179   : > { %v3010_v56 = vpop.f32.mrb[24].mxu0  ;;  %v3138_v57 = vpop.f32.mrb[24].mxu1 }
 0x17a   : > { %2351 = vst [vmem:[%s3875_s17 + $0xd0] sm:$0xff] %v3010_v56  ;;  %2479 = vst [vmem:[%s3875_s17 + $0x4d0] sm:$0xff] %v3138_v57  ;;  %v1398_v58 = vpop.f32.mrb[25].mxu0  ;;  %v1910_v59 = vpop.f32.mrb[25].mxu1 }
 0x17b   : > { %2349 = vst [vmem:[%s3875_s17 + $0xc0] sm:$0xff] %v1398_v58  ;;  %2477 = vst [vmem:[%s3875_s17 + $0x4c0] sm:$0xff] %v1910_v59  ;;  %v3011_v60 = vpop.f32.mrb[26].mxu0  ;;  %v3139_v61 = vpop.f32.mrb[26].mxu1 }
 0x17c   : > { %2352 = vst [vmem:[%s3875_s17 + $0xd8] sm:$0xff] %v3011_v60  ;;  %2480 = vst [vmem:[%s3875_s17 + $0x4d8] sm:$0xff] %v3139_v61  ;;  %v1401_v62 = vpop.f32.mrb[27].mxu0  ;;  %v1913_v63 = vpop.f32.mrb[27].mxu1 }
 0x17d   : > { %2350 = vst [vmem:[%s3875_s17 + $0xc8] sm:$0xff] %v1401_v62  ;;  %2478 = vst [vmem:[%s3875_s17 + $0x4c8] sm:$0xff] %v1913_v63 }
 0x181   : > { %v3014_v0 = vpop.f32.mrb[28].mxu0  ;;  %v3142_v1 = vpop.f32.mrb[28].mxu1 }
 0x182   : > { %2355 = vst [vmem:[%s3875_s17 + $0xf0] sm:$0xff] %v3014_v0  ;;  %2483 = vst [vmem:[%s3875_s17 + $0x4f0] sm:$0xff] %v3142_v1  ;;  %v1414_v2 = vpop.f32.mrb[29].mxu0  ;;  %v1926_v3 = vpop.f32.mrb[29].mxu1 }
 0x183   : > { %2353 = vst [vmem:[%s3875_s17 + $0xe0] sm:$0xff] %v1414_v2  ;;  %2481 = vst [vmem:[%s3875_s17 + $0x4e0] sm:$0xff] %v1926_v3  ;;  %v3015_v4 = vpop.f32.mrb[30].mxu0  ;;  %v3143_v5 = vpop.f32.mrb[30].mxu1 }
 0x184   : > { %2356 = vst [vmem:[%s3875_s17 + $0xf8] sm:$0xff] %v3015_v4  ;;  %2484 = vst [vmem:[%s3875_s17 + $0x4f8] sm:$0xff] %v3143_v5  ;;  %v1417_v6 = vpop.f32.mrb[31].mxu0  ;;  %v1929_v7 = vpop.f32.mrb[31].mxu1 }
 0x185   : > { %2354 = vst [vmem:[%s3875_s17 + $0xe8] sm:$0xff] %v1417_v6  ;;  %2482 = vst [vmem:[%s3875_s17 + $0x4e8] sm:$0xff] %v1929_v7 }
 0x189   : > { %v3018_v8 = vpop.f32.mrb[32].mxu0  ;;  %v3146_v9 = vpop.f32.mrb[32].mxu1 }
 0x18a   : > { %2359 = vst [vmem:[%s3875_s17 + $0x110] sm:$0xff] %v3018_v8  ;;  %2487 = vst [vmem:[%s3875_s17 + $0x510] sm:$0xff] %v3146_v9  ;;  %v1430_v10 = vpop.f32.mrb[33].mxu0  ;;  %v1942_v11 = vpop.f32.mrb[33].mxu1 }
 0x18b   : > { %2357 = vst [vmem:[%s3875_s17 + $0x100] sm:$0xff] %v1430_v10  ;;  %2485 = vst [vmem:[%s3875_s17 + $0x500] sm:$0xff] %v1942_v11  ;;  %v3019_v12 = vpop.f32.mrb[34].mxu0  ;;  %v3147_v13 = vpop.f32.mrb[34].mxu1 }
 0x18c   : > { %2360 = vst [vmem:[%s3875_s17 + $0x118] sm:$0xff] %v3019_v12  ;;  %2488 = vst [vmem:[%s3875_s17 + $0x518] sm:$0xff] %v3147_v13  ;;  %v1433_v14 = vpop.f32.mrb[35].mxu0  ;;  %v1945_v15 = vpop.f32.mrb[35].mxu1 }
 0x18d   : > { %2358 = vst [vmem:[%s3875_s17 + $0x108] sm:$0xff] %v1433_v14  ;;  %2486 = vst [vmem:[%s3875_s17 + $0x508] sm:$0xff] %v1945_v15 }
 0x191   : > { %v3022_v16 = vpop.f32.mrb[36].mxu0  ;;  %v3150_v17 = vpop.f32.mrb[36].mxu1 }
 0x192   : > { %2363 = vst [vmem:[%s3875_s17 + $0x130] sm:$0xff] %v3022_v16  ;;  %2491 = vst [vmem:[%s3875_s17 + $0x530] sm:$0xff] %v3150_v17  ;;  %v1446_v18 = vpop.f32.mrb[37].mxu0  ;;  %v1958_v19 = vpop.f32.mrb[37].mxu1 }
 0x193   : > { %2361 = vst [vmem:[%s3875_s17 + $0x120] sm:$0xff] %v1446_v18  ;;  %2489 = vst [vmem:[%s3875_s17 + $0x520] sm:$0xff] %v1958_v19  ;;  %v3023_v20 = vpop.f32.mrb[38].mxu0  ;;  %v3151_v21 = vpop.f32.mrb[38].mxu1 }
 0x194   : > { %2364 = vst [vmem:[%s3875_s17 + $0x138] sm:$0xff] %v3023_v20  ;;  %2492 = vst [vmem:[%s3875_s17 + $0x538] sm:$0xff] %v3151_v21  ;;  %v1449_v22 = vpop.f32.mrb[39].mxu0  ;;  %v1961_v23 = vpop.f32.mrb[39].mxu1 }
 0x195   : > { %2362 = vst [vmem:[%s3875_s17 + $0x128] sm:$0xff] %v1449_v22  ;;  %2490 = vst [vmem:[%s3875_s17 + $0x528] sm:$0xff] %v1961_v23 }
 0x199   : > { %v3026_v24 = vpop.f32.mrb[40].mxu0  ;;  %v3154_v25 = vpop.f32.mrb[40].mxu1 }
 0x19a   : > { %2367 = vst [vmem:[%s3875_s17 + $0x150] sm:$0xff] %v3026_v24  ;;  %2495 = vst [vmem:[%s3875_s17 + $0x550] sm:$0xff] %v3154_v25  ;;  %v1462_v26 = vpop.f32.mrb[41].mxu0  ;;  %v1974_v27 = vpop.f32.mrb[41].mxu1 }
 0x19b   : > { %2365 = vst [vmem:[%s3875_s17 + $0x140] sm:$0xff] %v1462_v26  ;;  %2493 = vst [vmem:[%s3875_s17 + $0x540] sm:$0xff] %v1974_v27  ;;  %v3027_v28 = vpop.f32.mrb[42].mxu0  ;;  %v3155_v29 = vpop.f32.mrb[42].mxu1 }
 0x19c   : > { %2368 = vst [vmem:[%s3875_s17 + $0x158] sm:$0xff] %v3027_v28  ;;  %2496 = vst [vmem:[%s3875_s17 + $0x558] sm:$0xff] %v3155_v29  ;;  %v1465_v30 = vpop.f32.mrb[43].mxu0  ;;  %v1977_v31 = vpop.f32.mrb[43].mxu1 }
 0x19d   : > { %2366 = vst [vmem:[%s3875_s17 + $0x148] sm:$0xff] %v1465_v30  ;;  %2494 = vst [vmem:[%s3875_s17 + $0x548] sm:$0xff] %v1977_v31 }
 0x1a1   : > { %v3030_v32 = vpop.f32.mrb[44].mxu0  ;;  %v3158_v33 = vpop.f32.mrb[44].mxu1 }
 0x1a2   : > { %2371 = vst [vmem:[%s3875_s17 + $0x170] sm:$0xff] %v3030_v32  ;;  %2499 = vst [vmem:[%s3875_s17 + $0x570] sm:$0xff] %v3158_v33  ;;  %v1478_v34 = vpop.f32.mrb[45].mxu0  ;;  %v1990_v35 = vpop.f32.mrb[45].mxu1 }
 0x1a3   : > { %2369 = vst [vmem:[%s3875_s17 + $0x160] sm:$0xff] %v1478_v34  ;;  %2497 = vst [vmem:[%s3875_s17 + $0x560] sm:$0xff] %v1990_v35  ;;  %v3031_v36 = vpop.f32.mrb[46].mxu0  ;;  %v3159_v37 = vpop.f32.mrb[46].mxu1 }
 0x1a4   : > { %2372 = vst [vmem:[%s3875_s17 + $0x178] sm:$0xff] %v3031_v36  ;;  %2500 = vst [vmem:[%s3875_s17 + $0x578] sm:$0xff] %v3159_v37  ;;  %v1481_v38 = vpop.f32.mrb[47].mxu0  ;;  %v1993_v39 = vpop.f32.mrb[47].mxu1 }
 0x1a5   : > { %2370 = vst [vmem:[%s3875_s17 + $0x168] sm:$0xff] %v1481_v38  ;;  %2498 = vst [vmem:[%s3875_s17 + $0x568] sm:$0xff] %v1993_v39 }
 0x1a9   : > { %v3034_v40 = vpop.f32.mrb[48].mxu0  ;;  %v3162_v41 = vpop.f32.mrb[48].mxu1 }
 0x1aa   : > { %2375 = vst [vmem:[%s3875_s17 + $0x190] sm:$0xff] %v3034_v40  ;;  %2503 = vst [vmem:[%s3875_s17 + $0x590] sm:$0xff] %v3162_v41  ;;  %v1494_v42 = vpop.f32.mrb[49].mxu0  ;;  %v2006_v43 = vpop.f32.mrb[49].mxu1 }
 0x1ab   : > { %2373 = vst [vmem:[%s3875_s17 + $0x180] sm:$0xff] %v1494_v42  ;;  %2501 = vst [vmem:[%s3875_s17 + $0x580] sm:$0xff] %v2006_v43  ;;  %v3035_v44 = vpop.f32.mrb[50].mxu0  ;;  %v3163_v45 = vpop.f32.mrb[50].mxu1 }
 0x1ac   : > { %2376 = vst [vmem:[%s3875_s17 + $0x198] sm:$0xff] %v3035_v44  ;;  %2504 = vst [vmem:[%s3875_s17 + $0x598] sm:$0xff] %v3163_v45  ;;  %v1497_v46 = vpop.f32.mrb[51].mxu0  ;;  %v2009_v47 = vpop.f32.mrb[51].mxu1 }
 0x1ad   : > { %2374 = vst [vmem:[%s3875_s17 + $0x188] sm:$0xff] %v1497_v46  ;;  %2502 = vst [vmem:[%s3875_s17 + $0x588] sm:$0xff] %v2009_v47 }
 0x1b1   : > { %v3038_v48 = vpop.f32.mrb[52].mxu0  ;;  %v3166_v49 = vpop.f32.mrb[52].mxu1 }
 0x1b2   : > { %2379 = vst [vmem:[%s3875_s17 + $0x1b0] sm:$0xff] %v3038_v48  ;;  %2507 = vst [vmem:[%s3875_s17 + $0x5b0] sm:$0xff] %v3166_v49  ;;  %v1510_v50 = vpop.f32.mrb[53].mxu0  ;;  %v2022_v51 = vpop.f32.mrb[53].mxu1 }
 0x1b3   : > { %2377 = vst [vmem:[%s3875_s17 + $0x1a0] sm:$0xff] %v1510_v50  ;;  %2505 = vst [vmem:[%s3875_s17 + $0x5a0] sm:$0xff] %v2022_v51  ;;  %v3039_v52 = vpop.f32.mrb[54].mxu0  ;;  %v3167_v53 = vpop.f32.mrb[54].mxu1 }
 0x1b4   : > { %2380 = vst [vmem:[%s3875_s17 + $0x1b8] sm:$0xff] %v3039_v52  ;;  %2508 = vst [vmem:[%s3875_s17 + $0x5b8] sm:$0xff] %v3167_v53  ;;  %v1513_v54 = vpop.f32.mrb[55].mxu0  ;;  %v2025_v55 = vpop.f32.mrb[55].mxu1 }
 0x1b5   : > { %2378 = vst [vmem:[%s3875_s17 + $0x1a8] sm:$0xff] %v1513_v54  ;;  %2506 = vst [vmem:[%s3875_s17 + $0x5a8] sm:$0xff] %v2025_v55 }
 0x1b9   : > { %v3042_v56 = vpop.f32.mrb[56].mxu0  ;;  %v3170_v57 = vpop.f32.mrb[56].mxu1 }
 0x1ba   : > { %2383 = vst [vmem:[%s3875_s17 + $0x1d0] sm:$0xff] %v3042_v56  ;;  %2511 = vst [vmem:[%s3875_s17 + $0x5d0] sm:$0xff] %v3170_v57  ;;  %v1526_v58 = vpop.f32.mrb[57].mxu0  ;;  %v2038_v59 = vpop.f32.mrb[57].mxu1 }
 0x1bb   : > { %2381 = vst [vmem:[%s3875_s17 + $0x1c0] sm:$0xff] %v1526_v58  ;;  %2509 = vst [vmem:[%s3875_s17 + $0x5c0] sm:$0xff] %v2038_v59  ;;  %v3043_v60 = vpop.f32.mrb[58].mxu0  ;;  %v3171_v61 = vpop.f32.mrb[58].mxu1 }
 0x1bc   : > { %2384 = vst [vmem:[%s3875_s17 + $0x1d8] sm:$0xff] %v3043_v60  ;;  %2512 = vst [vmem:[%s3875_s17 + $0x5d8] sm:$0xff] %v3171_v61  ;;  %v1529_v62 = vpop.f32.mrb[59].mxu0  ;;  %v2041_v63 = vpop.f32.mrb[59].mxu1 }
 0x1bd   : > { %2382 = vst [vmem:[%s3875_s17 + $0x1c8] sm:$0xff] %v1529_v62  ;;  %2510 = vst [vmem:[%s3875_s17 + $0x5c8] sm:$0xff] %v2041_v63 }
 0x1c1   : > { %v3046_v0 = vpop.f32.mrb[60].mxu0  ;;  %v3174_v1 = vpop.f32.mrb[60].mxu1 }
 0x1c2   : > { %2387 = vst [vmem:[%s3875_s17 + $0x1f0] sm:$0xff] %v3046_v0  ;;  %2515 = vst [vmem:[%s3875_s17 + $0x5f0] sm:$0xff] %v3174_v1  ;;  %v1542_v2 = vpop.f32.mrb[61].mxu0  ;;  %v2054_v3 = vpop.f32.mrb[61].mxu1 }
 0x1c3   : > { %2385 = vst [vmem:[%s3875_s17 + $0x1e0] sm:$0xff] %v1542_v2  ;;  %2513 = vst [vmem:[%s3875_s17 + $0x5e0] sm:$0xff] %v2054_v3  ;;  %v3047_v4 = vpop.f32.mrb[62].mxu0  ;;  %v3175_v5 = vpop.f32.mrb[62].mxu1 }
 0x1c4   : > { %2388 = vst [vmem:[%s3875_s17 + $0x1f8] sm:$0xff] %v3047_v4  ;;  %2516 = vst [vmem:[%s3875_s17 + $0x5f8] sm:$0xff] %v3175_v5  ;;  %v1545_v6 = vpop.f32.mrb[63].mxu0  ;;  %v2057_v7 = vpop.f32.mrb[63].mxu1 }
 0x1c5   : > { %2386 = vst [vmem:[%s3875_s17 + $0x1e8] sm:$0xff] %v1545_v6  ;;  %2514 = vst [vmem:[%s3875_s17 + $0x5e8] sm:$0xff] %v2057_v7 }
 0x1c9   : > { %v3050_v8 = vpop.f32.mrb[64].mxu0  ;;  %v3178_v9 = vpop.f32.mrb[64].mxu1 }
 0x1ca   : > { %2391 = vst [vmem:[%s3875_s17 + $0x210] sm:$0xff] %v3050_v8  ;;  %2519 = vst [vmem:[%s3875_s17 + $0x610] sm:$0xff] %v3178_v9  ;;  %v1558_v10 = vpop.f32.mrb[65].mxu0  ;;  %v2070_v11 = vpop.f32.mrb[65].mxu1 }
 0x1cb   : > { %2389 = vst [vmem:[%s3875_s17 + $0x200] sm:$0xff] %v1558_v10  ;;  %2517 = vst [vmem:[%s3875_s17 + $0x600] sm:$0xff] %v2070_v11  ;;  %v3051_v12 = vpop.f32.mrb[66].mxu0  ;;  %v3179_v13 = vpop.f32.mrb[66].mxu1 }
 0x1cc   : > { %2392 = vst [vmem:[%s3875_s17 + $0x218] sm:$0xff] %v3051_v12  ;;  %2520 = vst [vmem:[%s3875_s17 + $0x618] sm:$0xff] %v3179_v13  ;;  %v1561_v14 = vpop.f32.mrb[67].mxu0  ;;  %v2073_v15 = vpop.f32.mrb[67].mxu1 }
 0x1cd   : > { %2390 = vst [vmem:[%s3875_s17 + $0x208] sm:$0xff] %v1561_v14  ;;  %2518 = vst [vmem:[%s3875_s17 + $0x608] sm:$0xff] %v2073_v15 }
 0x1d1   : > { %v3054_v16 = vpop.f32.mrb[68].mxu0  ;;  %v3182_v17 = vpop.f32.mrb[68].mxu1 }
 0x1d2   : > { %2395 = vst [vmem:[%s3875_s17 + $0x230] sm:$0xff] %v3054_v16  ;;  %2523 = vst [vmem:[%s3875_s17 + $0x630] sm:$0xff] %v3182_v17  ;;  %v1574_v18 = vpop.f32.mrb[69].mxu0  ;;  %v2086_v19 = vpop.f32.mrb[69].mxu1 }
 0x1d3   : > { %2393 = vst [vmem:[%s3875_s17 + $0x220] sm:$0xff] %v1574_v18  ;;  %2521 = vst [vmem:[%s3875_s17 + $0x620] sm:$0xff] %v2086_v19  ;;  %v3055_v20 = vpop.f32.mrb[70].mxu0  ;;  %v3183_v21 = vpop.f32.mrb[70].mxu1 }
 0x1d4   : > { %2396 = vst [vmem:[%s3875_s17 + $0x238] sm:$0xff] %v3055_v20  ;;  %2524 = vst [vmem:[%s3875_s17 + $0x638] sm:$0xff] %v3183_v21  ;;  %v1577_v22 = vpop.f32.mrb[71].mxu0  ;;  %v2089_v23 = vpop.f32.mrb[71].mxu1 }
 0x1d5   : > { %2394 = vst [vmem:[%s3875_s17 + $0x228] sm:$0xff] %v1577_v22  ;;  %2522 = vst [vmem:[%s3875_s17 + $0x628] sm:$0xff] %v2089_v23 }
 0x1d9   : > { %v3058_v24 = vpop.f32.mrb[72].mxu0  ;;  %v3186_v25 = vpop.f32.mrb[72].mxu1 }
 0x1da   : > { %2399 = vst [vmem:[%s3875_s17 + $0x250] sm:$0xff] %v3058_v24  ;;  %2527 = vst [vmem:[%s3875_s17 + $0x650] sm:$0xff] %v3186_v25  ;;  %v1590_v26 = vpop.f32.mrb[73].mxu0  ;;  %v2102_v27 = vpop.f32.mrb[73].mxu1 }
 0x1db   : > { %2397 = vst [vmem:[%s3875_s17 + $0x240] sm:$0xff] %v1590_v26  ;;  %2525 = vst [vmem:[%s3875_s17 + $0x640] sm:$0xff] %v2102_v27  ;;  %v3059_v28 = vpop.f32.mrb[74].mxu0  ;;  %v3187_v29 = vpop.f32.mrb[74].mxu1 }
 0x1dc   : > { %2400 = vst [vmem:[%s3875_s17 + $0x258] sm:$0xff] %v3059_v28  ;;  %2528 = vst [vmem:[%s3875_s17 + $0x658] sm:$0xff] %v3187_v29  ;;  %v1593_v30 = vpop.f32.mrb[75].mxu0  ;;  %v2105_v31 = vpop.f32.mrb[75].mxu1 }
 0x1dd   : > { %2398 = vst [vmem:[%s3875_s17 + $0x248] sm:$0xff] %v1593_v30  ;;  %2526 = vst [vmem:[%s3875_s17 + $0x648] sm:$0xff] %v2105_v31 }
 0x1e1   : > { %v3062_v32 = vpop.f32.mrb[76].mxu0  ;;  %v3190_v33 = vpop.f32.mrb[76].mxu1 }
 0x1e2   : > { %2403 = vst [vmem:[%s3875_s17 + $0x270] sm:$0xff] %v3062_v32  ;;  %2531 = vst [vmem:[%s3875_s17 + $0x670] sm:$0xff] %v3190_v33  ;;  %v1606_v34 = vpop.f32.mrb[77].mxu0  ;;  %v2118_v35 = vpop.f32.mrb[77].mxu1 }
 0x1e3   : > { %2401 = vst [vmem:[%s3875_s17 + $0x260] sm:$0xff] %v1606_v34  ;;  %2529 = vst [vmem:[%s3875_s17 + $0x660] sm:$0xff] %v2118_v35  ;;  %v3063_v36 = vpop.f32.mrb[78].mxu0  ;;  %v3191_v37 = vpop.f32.mrb[78].mxu1 }
 0x1e4   : > { %2404 = vst [vmem:[%s3875_s17 + $0x278] sm:$0xff] %v3063_v36  ;;  %2532 = vst [vmem:[%s3875_s17 + $0x678] sm:$0xff] %v3191_v37  ;;  %v1609_v38 = vpop.f32.mrb[79].mxu0  ;;  %v2121_v39 = vpop.f32.mrb[79].mxu1 }
 0x1e5   : > { %2402 = vst [vmem:[%s3875_s17 + $0x268] sm:$0xff] %v1609_v38  ;;  %2530 = vst [vmem:[%s3875_s17 + $0x668] sm:$0xff] %v2121_v39 }
 0x1e9   : > { %v3066_v40 = vpop.f32.mrb[80].mxu0  ;;  %v3194_v41 = vpop.f32.mrb[80].mxu1 }
 0x1ea   : > { %2407 = vst [vmem:[%s3875_s17 + $0x290] sm:$0xff] %v3066_v40  ;;  %2535 = vst [vmem:[%s3875_s17 + $0x690] sm:$0xff] %v3194_v41  ;;  %v1622_v42 = vpop.f32.mrb[81].mxu0  ;;  %v2134_v43 = vpop.f32.mrb[81].mxu1 }
 0x1eb   : > { %2405 = vst [vmem:[%s3875_s17 + $0x280] sm:$0xff] %v1622_v42  ;;  %2533 = vst [vmem:[%s3875_s17 + $0x680] sm:$0xff] %v2134_v43  ;;  %v3067_v44 = vpop.f32.mrb[82].mxu0  ;;  %v3195_v45 = vpop.f32.mrb[82].mxu1 }
 0x1ec   : > { %2408 = vst [vmem:[%s3875_s17 + $0x298] sm:$0xff] %v3067_v44  ;;  %2536 = vst [vmem:[%s3875_s17 + $0x698] sm:$0xff] %v3195_v45  ;;  %v1625_v46 = vpop.f32.mrb[83].mxu0  ;;  %v2137_v47 = vpop.f32.mrb[83].mxu1 }
 0x1ed   : > { %2406 = vst [vmem:[%s3875_s17 + $0x288] sm:$0xff] %v1625_v46  ;;  %2534 = vst [vmem:[%s3875_s17 + $0x688] sm:$0xff] %v2137_v47 }
 0x1f1   : > { %v3070_v48 = vpop.f32.mrb[84].mxu0  ;;  %v3198_v49 = vpop.f32.mrb[84].mxu1 }
 0x1f2   : > { %2411 = vst [vmem:[%s3875_s17 + $0x2b0] sm:$0xff] %v3070_v48  ;;  %2539 = vst [vmem:[%s3875_s17 + $0x6b0] sm:$0xff] %v3198_v49  ;;  %v1638_v50 = vpop.f32.mrb[85].mxu0  ;;  %v2150_v51 = vpop.f32.mrb[85].mxu1 }
 0x1f3   : > { %2409 = vst [vmem:[%s3875_s17 + $0x2a0] sm:$0xff] %v1638_v50  ;;  %2537 = vst [vmem:[%s3875_s17 + $0x6a0] sm:$0xff] %v2150_v51  ;;  %v3071_v52 = vpop.f32.mrb[86].mxu0  ;;  %v3199_v53 = vpop.f32.mrb[86].mxu1 }
 0x1f4   : > { %2412 = vst [vmem:[%s3875_s17 + $0x2b8] sm:$0xff] %v3071_v52  ;;  %2540 = vst [vmem:[%s3875_s17 + $0x6b8] sm:$0xff] %v3199_v53  ;;  %v1641_v54 = vpop.f32.mrb[87].mxu0  ;;  %v2153_v55 = vpop.f32.mrb[87].mxu1 }
 0x1f5   : > { %2410 = vst [vmem:[%s3875_s17 + $0x2a8] sm:$0xff] %v1641_v54  ;;  %2538 = vst [vmem:[%s3875_s17 + $0x6a8] sm:$0xff] %v2153_v55 }
 0x1f9   : > { %v3074_v56 = vpop.f32.mrb[88].mxu0  ;;  %v3202_v57 = vpop.f32.mrb[88].mxu1 }
 0x1fa   : > { %2415 = vst [vmem:[%s3875_s17 + $0x2d0] sm:$0xff] %v3074_v56  ;;  %2543 = vst [vmem:[%s3875_s17 + $0x6d0] sm:$0xff] %v3202_v57  ;;  %v1654_v58 = vpop.f32.mrb[89].mxu0  ;;  %v2166_v59 = vpop.f32.mrb[89].mxu1 }
 0x1fb   : > { %2413 = vst [vmem:[%s3875_s17 + $0x2c0] sm:$0xff] %v1654_v58  ;;  %2541 = vst [vmem:[%s3875_s17 + $0x6c0] sm:$0xff] %v2166_v59  ;;  %v3075_v60 = vpop.f32.mrb[90].mxu0  ;;  %v3203_v61 = vpop.f32.mrb[90].mxu1 }
 0x1fc   : > { %2416 = vst [vmem:[%s3875_s17 + $0x2d8] sm:$0xff] %v3075_v60  ;;  %2544 = vst [vmem:[%s3875_s17 + $0x6d8] sm:$0xff] %v3203_v61  ;;  %v1657_v62 = vpop.f32.mrb[91].mxu0  ;;  %v2169_v63 = vpop.f32.mrb[91].mxu1 }
 0x1fd   : > { %2414 = vst [vmem:[%s3875_s17 + $0x2c8] sm:$0xff] %v1657_v62  ;;  %2542 = vst [vmem:[%s3875_s17 + $0x6c8] sm:$0xff] %v2169_v63 }
 0x201   : > { %v3078_v0 = vpop.f32.mrb[92].mxu0  ;;  %v3206_v1 = vpop.f32.mrb[92].mxu1 }
 0x202   : > { %2419 = vst [vmem:[%s3875_s17 + $0x2f0] sm:$0xff] %v3078_v0  ;;  %2547 = vst [vmem:[%s3875_s17 + $0x6f0] sm:$0xff] %v3206_v1  ;;  %v1670_v2 = vpop.f32.mrb[93].mxu0  ;;  %v2182_v3 = vpop.f32.mrb[93].mxu1 }
 0x203   : > { %2417 = vst [vmem:[%s3875_s17 + $0x2e0] sm:$0xff] %v1670_v2  ;;  %2545 = vst [vmem:[%s3875_s17 + $0x6e0] sm:$0xff] %v2182_v3  ;;  %v3079_v4 = vpop.f32.mrb[94].mxu0  ;;  %v3207_v5 = vpop.f32.mrb[94].mxu1 }
 0x204   : > { %2420 = vst [vmem:[%s3875_s17 + $0x2f8] sm:$0xff] %v3079_v4  ;;  %2548 = vst [vmem:[%s3875_s17 + $0x6f8] sm:$0xff] %v3207_v5  ;;  %v1673_v6 = vpop.f32.mrb[95].mxu0  ;;  %v2185_v7 = vpop.f32.mrb[95].mxu1 }
 0x205   : > { %2418 = vst [vmem:[%s3875_s17 + $0x2e8] sm:$0xff] %v1673_v6  ;;  %2546 = vst [vmem:[%s3875_s17 + $0x6e8] sm:$0xff] %v2185_v7 }
 0x209   : > { %v3082_v8 = vpop.f32.mrb[96].mxu0  ;;  %v3210_v9 = vpop.f32.mrb[96].mxu1 }
 0x20a   : > { %2423 = vst [vmem:[%s3875_s17 + $0x310] sm:$0xff] %v3082_v8  ;;  %2551 = vst [vmem:[%s3875_s17 + $0x710] sm:$0xff] %v3210_v9  ;;  %v1686_v10 = vpop.f32.mrb[97].mxu0  ;;  %v2198_v11 = vpop.f32.mrb[97].mxu1 }
 0x20b   : > { %2421 = vst [vmem:[%s3875_s17 + $0x300] sm:$0xff] %v1686_v10  ;;  %2549 = vst [vmem:[%s3875_s17 + $0x700] sm:$0xff] %v2198_v11  ;;  %v3083_v12 = vpop.f32.mrb[98].mxu0  ;;  %v3211_v13 = vpop.f32.mrb[98].mxu1 }
 0x20c   : > { %2424 = vst [vmem:[%s3875_s17 + $0x318] sm:$0xff] %v3083_v12  ;;  %2552 = vst [vmem:[%s3875_s17 + $0x718] sm:$0xff] %v3211_v13  ;;  %v1689_v14 = vpop.f32.mrb[99].mxu0  ;;  %v2201_v15 = vpop.f32.mrb[99].mxu1 }
 0x20d   : > { %2422 = vst [vmem:[%s3875_s17 + $0x308] sm:$0xff] %v1689_v14  ;;  %2550 = vst [vmem:[%s3875_s17 + $0x708] sm:$0xff] %v2201_v15 }
 0x211   : > { %v3086_v16 = vpop.f32.mrb[100].mxu0  ;;  %v3214_v17 = vpop.f32.mrb[100].mxu1 }
 0x212   : > { %2427 = vst [vmem:[%s3875_s17 + $0x330] sm:$0xff] %v3086_v16  ;;  %2555 = vst [vmem:[%s3875_s17 + $0x730] sm:$0xff] %v3214_v17  ;;  %v1702_v18 = vpop.f32.mrb[101].mxu0  ;;  %v2214_v19 = vpop.f32.mrb[101].mxu1 }
 0x213   : > { %2425 = vst [vmem:[%s3875_s17 + $0x320] sm:$0xff] %v1702_v18  ;;  %2553 = vst [vmem:[%s3875_s17 + $0x720] sm:$0xff] %v2214_v19  ;;  %v3087_v20 = vpop.f32.mrb[102].mxu0  ;;  %v3215_v21 = vpop.f32.mrb[102].mxu1 }
 0x214   : > { %2428 = vst [vmem:[%s3875_s17 + $0x338] sm:$0xff] %v3087_v20  ;;  %2556 = vst [vmem:[%s3875_s17 + $0x738] sm:$0xff] %v3215_v21  ;;  %v1705_v22 = vpop.f32.mrb[103].mxu0  ;;  %v2217_v23 = vpop.f32.mrb[103].mxu1 }
 0x215   : > { %2426 = vst [vmem:[%s3875_s17 + $0x328] sm:$0xff] %v1705_v22  ;;  %2554 = vst [vmem:[%s3875_s17 + $0x728] sm:$0xff] %v2217_v23 }
 0x219   : > { %v3090_v24 = vpop.f32.mrb[104].mxu0  ;;  %v3218_v25 = vpop.f32.mrb[104].mxu1 }
 0x21a   : > { %2431 = vst [vmem:[%s3875_s17 + $0x350] sm:$0xff] %v3090_v24  ;;  %2559 = vst [vmem:[%s3875_s17 + $0x750] sm:$0xff] %v3218_v25  ;;  %v1718_v26 = vpop.f32.mrb[105].mxu0  ;;  %v2230_v27 = vpop.f32.mrb[105].mxu1 }
 0x21b   : > { %2429 = vst [vmem:[%s3875_s17 + $0x340] sm:$0xff] %v1718_v26  ;;  %2557 = vst [vmem:[%s3875_s17 + $0x740] sm:$0xff] %v2230_v27  ;;  %v3091_v28 = vpop.f32.mrb[106].mxu0  ;;  %v3219_v29 = vpop.f32.mrb[106].mxu1 }
 0x21c   : > { %2432 = vst [vmem:[%s3875_s17 + $0x358] sm:$0xff] %v3091_v28  ;;  %2560 = vst [vmem:[%s3875_s17 + $0x758] sm:$0xff] %v3219_v29  ;;  %v1721_v30 = vpop.f32.mrb[107].mxu0  ;;  %v2233_v31 = vpop.f32.mrb[107].mxu1 }
 0x21d   : > { %2430 = vst [vmem:[%s3875_s17 + $0x348] sm:$0xff] %v1721_v30  ;;  %2558 = vst [vmem:[%s3875_s17 + $0x748] sm:$0xff] %v2233_v31 }
 0x221   : > { %v3094_v32 = vpop.f32.mrb[108].mxu0  ;;  %v3222_v33 = vpop.f32.mrb[108].mxu1 }
 0x222   : > { %2435 = vst [vmem:[%s3875_s17 + $0x370] sm:$0xff] %v3094_v32  ;;  %2563 = vst [vmem:[%s3875_s17 + $0x770] sm:$0xff] %v3222_v33  ;;  %v1734_v34 = vpop.f32.mrb[109].mxu0  ;;  %v2246_v35 = vpop.f32.mrb[109].mxu1 }
 0x223   : > { %2433 = vst [vmem:[%s3875_s17 + $0x360] sm:$0xff] %v1734_v34  ;;  %2561 = vst [vmem:[%s3875_s17 + $0x760] sm:$0xff] %v2246_v35  ;;  %v3095_v36 = vpop.f32.mrb[110].mxu0  ;;  %v3223_v37 = vpop.f32.mrb[110].mxu1 }
 0x224   : > { %2436 = vst [vmem:[%s3875_s17 + $0x378] sm:$0xff] %v3095_v36  ;;  %2564 = vst [vmem:[%s3875_s17 + $0x778] sm:$0xff] %v3223_v37  ;;  %v1737_v38 = vpop.f32.mrb[111].mxu0  ;;  %v2249_v39 = vpop.f32.mrb[111].mxu1 }
 0x225   : > { %2434 = vst [vmem:[%s3875_s17 + $0x368] sm:$0xff] %v1737_v38  ;;  %2562 = vst [vmem:[%s3875_s17 + $0x768] sm:$0xff] %v2249_v39 }
 0x229   : > { %v3098_v40 = vpop.f32.mrb[112].mxu0  ;;  %v3226_v41 = vpop.f32.mrb[112].mxu1 }
 0x22a   : > { %2439 = vst [vmem:[%s3875_s17 + $0x390] sm:$0xff] %v3098_v40  ;;  %2567 = vst [vmem:[%s3875_s17 + $0x790] sm:$0xff] %v3226_v41  ;;  %v1750_v42 = vpop.f32.mrb[113].mxu0  ;;  %v2262_v43 = vpop.f32.mrb[113].mxu1 }
 0x22b   : > { %2437 = vst [vmem:[%s3875_s17 + $0x380] sm:$0xff] %v1750_v42  ;;  %2565 = vst [vmem:[%s3875_s17 + $0x780] sm:$0xff] %v2262_v43  ;;  %v3099_v44 = vpop.f32.mrb[114].mxu0  ;;  %v3227_v45 = vpop.f32.mrb[114].mxu1 }
 0x22c   : > { %2440 = vst [vmem:[%s3875_s17 + $0x398] sm:$0xff] %v3099_v44  ;;  %2568 = vst [vmem:[%s3875_s17 + $0x798] sm:$0xff] %v3227_v45  ;;  %v1753_v46 = vpop.f32.mrb[115].mxu0  ;;  %v2265_v47 = vpop.f32.mrb[115].mxu1 }
 0x22d   : > { %2438 = vst [vmem:[%s3875_s17 + $0x388] sm:$0xff] %v1753_v46  ;;  %2566 = vst [vmem:[%s3875_s17 + $0x788] sm:$0xff] %v2265_v47 }
 0x231   : > { %v3102_v48 = vpop.f32.mrb[116].mxu0  ;;  %v3230_v49 = vpop.f32.mrb[116].mxu1 }
 0x232   : > { %2443 = vst [vmem:[%s3875_s17 + $0x3b0] sm:$0xff] %v3102_v48  ;;  %2571 = vst [vmem:[%s3875_s17 + $0x7b0] sm:$0xff] %v3230_v49  ;;  %v1766_v50 = vpop.f32.mrb[117].mxu0  ;;  %v2278_v51 = vpop.f32.mrb[117].mxu1 }
 0x233   : > { %2441 = vst [vmem:[%s3875_s17 + $0x3a0] sm:$0xff] %v1766_v50  ;;  %2569 = vst [vmem:[%s3875_s17 + $0x7a0] sm:$0xff] %v2278_v51  ;;  %v3103_v52 = vpop.f32.mrb[118].mxu0  ;;  %v3231_v53 = vpop.f32.mrb[118].mxu1 }
 0x234   : > { %2444 = vst [vmem:[%s3875_s17 + $0x3b8] sm:$0xff] %v3103_v52  ;;  %2572 = vst [vmem:[%s3875_s17 + $0x7b8] sm:$0xff] %v3231_v53  ;;  %v1769_v54 = vpop.f32.mrb[119].mxu0  ;;  %v2281_v55 = vpop.f32.mrb[119].mxu1 }
 0x235   : > { %2442 = vst [vmem:[%s3875_s17 + $0x3a8] sm:$0xff] %v1769_v54  ;;  %2570 = vst [vmem:[%s3875_s17 + $0x7a8] sm:$0xff] %v2281_v55 }
 0x239   : > { %v3106_v56 = vpop.f32.mrb[120].mxu0  ;;  %v3234_v57 = vpop.f32.mrb[120].mxu1 }
 0x23a   : > { %2447 = vst [vmem:[%s3875_s17 + $0x3d0] sm:$0xff] %v3106_v56  ;;  %2575 = vst [vmem:[%s3875_s17 + $0x7d0] sm:$0xff] %v3234_v57  ;;  %v1782_v58 = vpop.f32.mrb[121].mxu0  ;;  %v2294_v59 = vpop.f32.mrb[121].mxu1 }
 0x23b   : > { %2445 = vst [vmem:[%s3875_s17 + $0x3c0] sm:$0xff] %v1782_v58  ;;  %2573 = vst [vmem:[%s3875_s17 + $0x7c0] sm:$0xff] %v2294_v59  ;;  %v3107_v60 = vpop.f32.mrb[122].mxu0  ;;  %v3235_v61 = vpop.f32.mrb[122].mxu1 }
 0x23c   : > { %2448 = vst [vmem:[%s3875_s17 + $0x3d8] sm:$0xff] %v3107_v60  ;;  %2576 = vst [vmem:[%s3875_s17 + $0x7d8] sm:$0xff] %v3235_v61  ;;  %v1785_v62 = vpop.f32.mrb[123].mxu0  ;;  %v2297_v63 = vpop.f32.mrb[123].mxu1 }
 0x23d   : > { %2446 = vst [vmem:[%s3875_s17 + $0x3c8] sm:$0xff] %v1785_v62  ;;  %2574 = vst [vmem:[%s3875_s17 + $0x7c8] sm:$0xff] %v2297_v63 }
 0x241   : > { %v3110_v0 = vpop.f32.mrb[124].mxu0  ;;  %v3238_v1 = vpop.f32.mrb[124].mxu1 }
 0x242   : > { %2451 = vst [vmem:[%s3875_s17 + $0x3f0] sm:$0xff] %v3110_v0  ;;  %2579 = vst [vmem:[%s3875_s17 + $0x7f0] sm:$0xff] %v3238_v1  ;;  %v1798_v2 = vpop.f32.mrb[125].mxu0  ;;  %v2310_v3 = vpop.f32.mrb[125].mxu1 }
 0x243   : > { %2449 = vst [vmem:[%s3875_s17 + $0x3e0] sm:$0xff] %v1798_v2  ;;  %2577 = vst [vmem:[%s3875_s17 + $0x7e0] sm:$0xff] %v2310_v3  ;;  %v3111_v4 = vpop.f32.mrb[126].mxu0  ;;  %v3239_v5 = vpop.f32.mrb[126].mxu1 }
 0x244   : > { %2452 = vst [vmem:[%s3875_s17 + $0x3f8] sm:$0xff] %v3111_v4  ;;  %2580 = vst [vmem:[%s3875_s17 + $0x7f8] sm:$0xff] %v3239_v5  ;;  %v1801_v6 = vpop.f32.mrb[127].mxu0  ;;  %v2313_v7 = vpop.f32.mrb[127].mxu1 }
 0x245   : > { %2450 = vst [vmem:[%s3875_s17 + $0x3e8] sm:$0xff] %v1801_v6  ;;  %2578 = vst [vmem:[%s3875_s17 + $0x7e8] sm:$0xff] %v2313_v7 }
 0x246   : > { %3524 = shalt.err (!%p3521_p7)
}
 0x247   : > { %s3525_s18 = scalar_lea.hbm %s4150_s23, 32768  ;;  %s3529_s26 = scalar_lea.hbm %s4204_s2, 65536 }
 0x248   : > { %p3526_p9 = scmp.ne.s32.totalorder %s4150_s23, %s3525_s18  ;;  %p3530_p5 = scmp.lt.u32.totalorder %s4150_s23, %s4204_s2 }
 0x249   : > { %p3531_p11 = scmp.lt.u32.totalorder %s3529_s26, %s3525_s18  ;;  %p3533_p4 = scmp.lt.u32.totalorder %s3525_s18, %s4150_s23 }
 0x24a   : > { %p3527_p1 = pnand %p3526_p9, %p3699_p12 }
 0x24b   : > { %p3532_p2 = por %p3531_p11, %p3530_p5 }
 0x24c   : > { %p3528_p0 = pneg %p3527_p1 }
 0x24d   : > { %p3534_p6 = por %p3533_p4, %p3532_p2 }
 0x24f   : > { %p3535_p8 = pnand %p3534_p6, %p3528_p0 }
 0x251   : > { %3538 = shalt.err (!%p3535_p8)
}
 0x252   : > { %s3588_s3 = smov 128   ;;  %s3589_s15 = smov 8  }
 0x253   : > { %3262 = dma.vmem_to_hbm [thread:$0]  (%p3699_p12), %s4152_s5, 32768, %s4150_s23, %s2582_s13, %s3588_s3, %s3588_s3, %s3589_s15  }
 0x254 PF: > { %s2610_s17 = sand.u32 1, %s3569_s9   ;;  %p4219_p10 = scmp.ne.s32.totalorder %s4209_s16, 0 }
 0x255   : > { %p4220_p13 = scmp.ge.s32.totalorder %s3581_s12, 2  ;;  %s2611_s4 = scalar_lea.sflag [#allocation4], %s2610_s17 }
 0x257   : > { %p3273_p3 = pnand %p4220_p13, %p4219_p10 }
 0x259   : > { %3564 = dma.done.wait (!%p3273_p3), %s2611_s4, 32768  }
 0x25a   : > { %3566 = vsyncadd (!%p3273_p3), %s2611_s4, 4294934528  ;;  %p16_p7 = scmp.ge.s32.totalorder %s3661_s21, 4   ;;  %s4221_s9 = smov %s3573_s10 }
 0x25b   : > { %s4222_s10 = smov %s3577_s11  ;;  %s4223_s11 = smov %s3695_s8 }
 0x25c   : > { %s4224_s12 = smov %s3661_s21  ;;  %18 = sbr.rel (!%p16_p7) target bundleno = 6 (0x6), region = 77 }
 0x263   :  { %2616 = vsyncpa [#allocation3], 1 }
 0x264   :  { %2618 = vsyncpa [#allocation3 + $0x1], 1 }
 0x265   :  { %2619 = vsyncpa [#allocation6], 1 }
 0x266   :  { %2620 = vsyncpa [#allocation4], 1 }
 0x267   :  { %2622 = vsyncpa [#allocation4 + $0x1], 1 }

</bundles_post_ra>
